<compile_context>
chip_gen: v7x
topology: tpu7x:2x2x1
jax: 0.10.0
libtpu: 0.0.40
codegen_flags: <defaults>
</compile_context>

<pallas_src>
from functools import partial

import numpy as np
import jax
import jax.numpy as jnp
from jax.experimental import pallas as pl
from jax.experimental.pallas import tpu as pltpu


# -----------------------------------------------------------------------------
# Fused Pallas kernel: all coupling blocks (+ rotations) in one call, (D, B) layout
# -----------------------------------------------------------------------------
def realnvp_fused_kernel(
    z_ref,                                   # (D, TILE_B)           batch on lanes
    w1_ref, b1_ref,                          # (BLK, 2H, D), (BLK, 2H, 1)
    w2_ref, b2_ref,                          # (BLK, 2H, 2H), (BLK, 2H, 1)
    w3_ref, b3_ref,                          # (BLK, 2D, 2H), (BLK, 2D, 1)
    r_ref,                                   # (BLK-1, D, D) rotation R (applied as R @ y)
    out_ref,                                 # (D, TILE_B)
    inter_ref,                               # (BLK-1, D, TILE_B)  z before blocks 1..BLK-1
    *, d: int, blocks: int,
):
    z = z_ref[...]                           # (D, TILE_B) fp32, stays in vregs/VMEM
    for blk in range(blocks):                # static unroll over coupling blocks
        if blk > 0:
            inter_ref[blk - 1] = z           # intermediate = input of this block (blk 0 == x)

        # Fused translation+scaling MLP (this *is* translation_net.forward, done for both
        # subnets at once); zero-padded W1 columns make the subnets see only x1, exactly.
        h = jnp.maximum(
            jnp.dot(w1_ref[blk], z, preferred_element_type=jnp.float32) + b1_ref[blk], 0.0)
        h = jnp.maximum(
            jnp.dot(w2_ref[blk], h, preferred_element_type=jnp.float32) + b2_ref[blk], 0.0)
        ts = jnp.dot(w3_ref[blk], h, preferred_element_type=jnp.float32) + b3_ref[blk]

        # Full-width coupling: passthrough rows have trans == 0 and exp(tanh(0)) == 1,
        # so y = z * scale + trans reproduces [x1 ; x2*scale+trans] with no slices/concats.
        trans = ts[:d, :]                    # (D, TILE_B)  sublane split at the 8-row boundary
        scale = jnp.exp(jnp.tanh(ts[d:, :])) # (D, TILE_B)
        y = z * scale + trans

        if blk < blocks - 1:
            # Reference does z_new = y_rows @ R.T; in column layout that is z = R @ y.
            z = jnp.dot(r_ref[blk], y, preferred_element_type=jnp.float32)
        else:
            out_ref[...] = y                 # last block: no rotation in the reference model


def _pick_tile_b(batch: int) -> int:
    """Batch rides the 128-lane axis: tiles are multiples of 128, as large as useful
    (amortize ~0.35us/grid-step) while aiming for >= 2 grid steps (v7x has 2 TensorCores)
    and staying far below scoped-VMEM limits (v5e default 16 MiB)."""
    cap = 4096                               # (8, 4096) f32 tile = 128 KiB; double-buffered << VMEM
    if batch <= 256:
        return 128
    half_rounded = ((batch // 2) // 128) * 128
    return int(min(cap, max(128, half_rounded)))


def realnvp_forward(x, fused, d_tilde, d_out):
    """Mirrors RealNVP.forward: returns (intermediates, z). One pallas_call total."""
    B, D = x.shape
    blocks = fused["w1"].shape[0]
    assert blocks >= 2
    tile_b = _pick_tile_b(B)
    padded_B = pl.cdiv(B, tile_b) * tile_b
    grid = (padded_B // tile_b,)

    # Wrapper-side layout plumbing: (B, D) -> (D, padded_B) so batch is on the lane axis.
    xt = x.T
    if padded_B != B:
        xt = jnp.pad(xt, ((0, 0), (0, padded_B - B)))

    const3 = lambda i: (0, 0, 0)             # weights stay VMEM-resident across the grid
    weight_specs = [pl.BlockSpec(fused[k].shape, const3)
                    for k in ("w1", "b1", "w2", "b2", "w3", "b3", "r")]

    out_t, inter_t = pl.pallas_call(
        partial(realnvp_fused_kernel, d=D, blocks=blocks),
        out_shape=(jax.ShapeDtypeStruct((D, padded_B), jnp.float32),
                   jax.ShapeDtypeStruct((blocks - 1, D, padded_B), jnp.float32)),
        grid=grid,
        in_specs=[pl.BlockSpec((D, tile_b), lambda i: (0, i))] + weight_specs,
        out_specs=(pl.BlockSpec((D, tile_b), lambda i: (0, i)),
                   pl.BlockSpec((blocks - 1, D, tile_b), lambda i: (0, 0, i))),
        compiler_params=pltpu.CompilerParams(dimension_semantics=("parallel",)),
    )(xt, fused["w1"], fused["b1"], fused["w2"], fused["b2"],
      fused["w3"], fused["b3"], fused["r"])

    z = out_t[:, :B].T
    intermediates = [x] + [inter_t[i, :, :B].T for i in range(blocks - 1)]
    return intermediates, z


# -----------------------------------------------------------------------------
# Deterministic parameter construction + fused packing
# -----------------------------------------------------------------------------
def init_linear(key, fan_in, fan_out):
    kw, kb = jax.random.split(key)
    bound = 1.0 / np.sqrt(fan_in)
    w = jax.random.uniform(kw, (fan_in, fan_out), jnp.float32, -bound, bound)
    b = jax.random.uniform(kb, (1, fan_out), jnp.float32, -bound, bound)
    return w, b


def build_params(key, input_size, hidden, blocks):
    d_tilde = input_size // 2
    d_out = input_size - d_tilde
    params = []
    for _ in range(blocks):
        keys = jax.random.split(key, 7)
        key = keys[0]
        tw1, tb1 = init_linear(keys[1], d_tilde, hidden)     # translation_net fc1..fc3
        tw2, tb2 = init_linear(keys[2], hidden, hidden)
        tw3, tb3 = init_linear(keys[3], hidden, d_out)
        sw1, sb1 = init_linear(keys[4], d_tilde, hidden)     # scaling_net fc1..fc3
        sw2, sb2 = init_linear(keys[5], hidden, hidden)
        sw3, sb3 = init_linear(keys[6], hidden, d_out)
        params.append((tw1, tb1, tw2, tb2, tw3, tb3,
                       sw1, sb1, sw2, sb2, sw3, sb3))

    # rotation matrices R (blocks - 1 of them) via QR of standard-normal (plain JAX).
    rots = []
    for _ in range(blocks - 1):
        key, sub = jax.random.split(key)
        a = jax.random.normal(sub, (input_size, input_size), jnp.float32)
        q, _ = jnp.linalg.qr(a)
        rots.append(q.astype(jnp.float32))
    return params, rots, d_tilde, d_out


def pack_fused(params, rots, hidden, d_tilde, d_out, input_size):
    """Stack per-block weights in (out, in) layout and fuse translation+scaling nets.
    Packing is exact: zero columns/rows contribute exact +0.0 and exp(tanh(0)) == 1."""
    H, D = hidden, input_size
    w1s, b1s, w2s, b2s, w3s, b3s = [], [], [], [], [], []
    zhh = jnp.zeros((H, H), jnp.float32)
    for (tw1, tb1, tw2, tb2, tw3, tb3, sw1, sb1, sw2, sb2, sw3, sb3) in params:
        # fc1 of both subnets: (2H, D); columns for x2 are zero (subnets only see x1).
        w1_half = jnp.concatenate([tw1.T, sw1.T], axis=0)                       # (2H, d_tilde)
        w1s.append(jnp.concatenate(
            [w1_half, jnp.zeros((2 * H, D - d_tilde), jnp.float32)], axis=1))   # (2H, D)
        b1s.append(jnp.concatenate([tb1, sb1], axis=1).T)                       # (2H, 1)
        # fc2: block-diagonal (2H, 2H).
        w2s.append(jnp.block([[tw2.T, zhh], [zhh, sw2.T]]))                     # (2H, 2H)
        b2s.append(jnp.concatenate([tb2, sb2], axis=1).T)                       # (2H, 1)
        # fc3 padded to full feature width:
        #   rows 0..D-1   -> trans_full     (zero rows for the passthrough features)
        #   rows D..2D-1  -> tanh-arg_full  (zero rows -> exp(tanh(0)) == 1)
        trans_rows = jnp.concatenate(
            [jnp.zeros((d_tilde, 2 * H), jnp.float32),
             jnp.concatenate([tw3.T, jnp.zeros((d_out, H), jnp.float32)], axis=1)], axis=0)
        scale_rows = jnp.concatenate(
            [jnp.zeros((d_tilde, 2 * H), jnp.float32),
             jnp.concatenate([jnp.zeros((d_out, H), jnp.float32), sw3.T], axis=1)], axis=0)
        w3s.append(jnp.concatenate([trans_rows, scale_rows], axis=0))           # (2D, 2H)
        b3s.append(jnp.concatenate(
            [jnp.zeros((d_tilde,), jnp.float32), tb3[0],
             jnp.zeros((d_tilde,), jnp.float32), sb3[0]], axis=0)[:, None])     # (2D, 1)
    return dict(
        w1=jnp.stack(w1s), b1=jnp.stack(b1s),
        w2=jnp.stack(w2s), b2=jnp.stack(b2s),
        w3=jnp.stack(w3s), b3=jnp.stack(b3s),
        r=(jnp.stack(rots) if rots
           else jnp.eye(input_size, dtype=jnp.float32)[None]),
    )


# -----------------------------------------------------------------------------
# Pure-JAX reference with the ORIGINAL (unfused, row-layout) parameterization
# -----------------------------------------------------------------------------
def ref_forward(x, params, rots, d_tilde):
    z = x
    inters = []
    for idx, blk in enumerate(params):
        inters.append(z)
        (tw1, tb1, tw2, tb2, tw3, tb3, sw1, sb1, sw2, sb2, sw3, sb3) = blk
        x1, x2 = z[:, :d_tilde], z[:, d_tilde:]

        def mlp(h, w1, b1, w2, b2, w3, b3):            # == translation_net.forward
            h = jnp.maximum(h @ w1 + b1, 0.0)
            h = jnp.maximum(h @ w2 + b2, 0.0)
            return h @ w3 + b3

        trans = mlp(x1, tw1, tb1, tw2, tb2, tw3, tb3)
        scale = jnp.exp(jnp.tanh(mlp(x1, sw1, sb1, sw2, sb2, sw3, sb3)))
        z_new = jnp.concatenate([x1, x2 * scale + trans], axis=1)
        z = z_new @ rots[idx].T if idx < len(params) - 1 else z_new
    return inters, z


# -----------------------------------------------------------------------------
if __name__ == "__main__":
    INPUT_SIZE = 8     # data_dim D
    HIDDEN = 32        # width of translation / scaling subnetworks
    BLOCKS = 3         # number of coupling layers
    BATCH = 200        # non-multiple of the tile -> exercises padding + 2-step grid

    key = jax.random.PRNGKey(0)
    kx, kp = jax.random.split(key)
    x = jax.random.normal(kx, (BATCH, INPUT_SIZE), jnp.float32)

    params, rots, d_tilde, d_out = build_params(kp, INPUT_SIZE, HIDDEN, BLOCKS)
    fused = pack_fused(params, rots, HIDDEN, d_tilde, d_out, INPUT_SIZE)

    intermediates, z = realnvp_forward(x, fused, d_tilde, d_out)
    z = jax.block_until_ready(z)

    inters_ref, z_ref = ref_forward(x, params, rots, d_tilde)
    np.testing.assert_allclose(np.asarray(z), np.asarray(z_ref), rtol=1e-5, atol=1e-5)
    assert len(intermediates) == BLOCKS
    assert intermediates[0].shape == (BATCH, INPUT_SIZE)
    for got, ref in zip(intermediates, inters_ref):
        np.testing.assert_allclose(np.asarray(got), np.asarray(ref), rtol=1e-5, atol=1e-5)

    print("KERNEL_OK")
</pallas_src>

<mosaic_0001>
module attributes {stable_mosaic.version = 11 : i64} {
  func.func @realnvp_fused_kernel(%arg0: i32, %arg1: memref<8x128xf32, #tpu.memory_space<vmem>>, %arg2: memref<3x64x8xf32, #tpu.memory_space<vmem>>, %arg3: memref<3x64x1xf32, #tpu.memory_space<vmem>>, %arg4: memref<3x64x64xf32, #tpu.memory_space<vmem>>, %arg5: memref<3x64x1xf32, #tpu.memory_space<vmem>>, %arg6: memref<3x16x64xf32, #tpu.memory_space<vmem>>, %arg7: memref<3x16x1xf32, #tpu.memory_space<vmem>>, %arg8: memref<2x8x8xf32, #tpu.memory_space<vmem>>, %arg9: memref<8x128xf32, #tpu.memory_space<vmem>>, %arg10: memref<2x8x128xf32, #tpu.memory_space<vmem>>) attributes {dimension_semantics = [#tpu.dimension_semantics<parallel>], iteration_bounds = array<i64: 2>, scalar_prefetch = 0 : i64, scratch_operands = 0 : i64, tpu.core_type = #tpu.core_type<tc>, window_params = [{transform_indices = @transform_0, window_bounds = array<i64: 8, 128>}, {pipeline_mode = #tpu.pipeline_mode<synchronous>, transform_indices = @transform_1, window_bounds = array<i64: 3, 64, 8>}, {pipeline_mode = #tpu.pipeline_mode<synchronous>, transform_indices = @transform_2, window_bounds = array<i64: 3, 64, 1>}, {pipeline_mode = #tpu.pipeline_mode<synchronous>, transform_indices = @transform_3, window_bounds = array<i64: 3, 64, 64>}, {pipeline_mode = #tpu.pipeline_mode<synchronous>, transform_indices = @transform_4, window_bounds = array<i64: 3, 64, 1>}, {pipeline_mode = #tpu.pipeline_mode<synchronous>, transform_indices = @transform_5, window_bounds = array<i64: 3, 16, 64>}, {pipeline_mode = #tpu.pipeline_mode<synchronous>, transform_indices = @transform_6, window_bounds = array<i64: 3, 16, 1>}, {pipeline_mode = #tpu.pipeline_mode<synchronous>, transform_indices = @transform_7, window_bounds = array<i64: 2, 8, 8>}, {transform_indices = @transform_8, window_bounds = array<i64: 8, 128>}, {transform_indices = @transform_9, window_bounds = array<i64: 2, 8, 128>}]} {
    %c0 = arith.constant 0 : index
    %c0_0 = arith.constant 0 : index
    %0 = vector.load %arg1[%c0, %c0_0] : memref<8x128xf32, #tpu.memory_space<vmem>>, vector<8x128xf32>
    %c0_1 = arith.constant 0 : index
    %c0_2 = arith.constant 0 : index
    %c0_3 = arith.constant 0 : index
    %1 = vector.load %arg2[%c0_1, %c0_2, %c0_3] : memref<3x64x8xf32, #tpu.memory_space<vmem>>, vector<1x64x8xf32>
    %2 = vector.shape_cast %1 : vector<1x64x8xf32> to vector<64x8xf32>
    %cst = arith.constant dense<0.000000e+00> : vector<64x128xf32>
    %3 = tpu.matmul %2, %0, %cst {dimension_numbers = #tpu.dot_dimension_numbers<[1], [0], [0], [1], [0, 0, 1, 1], [], []>} : vector<64x8xf32>, vector<8x128xf32>, vector<64x128xf32> -> vector<64x128xf32>
    %c0_4 = arith.constant 0 : index
    %c0_5 = arith.constant 0 : index
    %c0_6 = arith.constant 0 : index
    %4 = vector.load %arg3[%c0_4, %c0_5, %c0_6] : memref<3x64x1xf32, #tpu.memory_space<vmem>>, vector<1x64x1xf32>
    %5 = vector.shape_cast %4 : vector<1x64x1xf32> to vector<64x1xf32>
    %6 = vector.broadcast %5 : vector<64x1xf32> to vector<64x128xf32>
    %7 = arith.addf %3, %6 : vector<64x128xf32>
    %cst_7 = arith.constant 0.000000e+00 : f32
    %8 = vector.broadcast %cst_7 : f32 to vector<64x128xf32>
    %9 = arith.maximumf %7, %8 : vector<64x128xf32>
    %c0_8 = arith.constant 0 : index
    %c0_9 = arith.constant 0 : index
    %c0_10 = arith.constant 0 : index
    %10 = vector.load %arg4[%c0_8, %c0_9, %c0_10] : memref<3x64x64xf32, #tpu.memory_space<vmem>>, vector<1x64x64xf32>
    %11 = vector.shape_cast %10 : vector<1x64x64xf32> to vector<64x64xf32>
    %cst_11 = arith.constant dense<0.000000e+00> : vector<64x128xf32>
    %12 = tpu.matmul %11, %9, %cst_11 {dimension_numbers = #tpu.dot_dimension_numbers<[1], [0], [0], [1], [0, 0, 1, 1], [], []>} : vector<64x64xf32>, vector<64x128xf32>, vector<64x128xf32> -> vector<64x128xf32>
    %c0_12 = arith.constant 0 : index
    %c0_13 = arith.constant 0 : index
    %c0_14 = arith.constant 0 : index
    %13 = vector.load %arg5[%c0_12, %c0_13, %c0_14] : memref<3x64x1xf32, #tpu.memory_space<vmem>>, vector<1x64x1xf32>
    %14 = vector.shape_cast %13 : vector<1x64x1xf32> to vector<64x1xf32>
    %15 = vector.broadcast %14 : vector<64x1xf32> to vector<64x128xf32>
    %16 = arith.addf %12, %15 : vector<64x128xf32>
    %cst_15 = arith.constant 0.000000e+00 : f32
    %17 = vector.broadcast %cst_15 : f32 to vector<64x128xf32>
    %18 = arith.maximumf %16, %17 : vector<64x128xf32>
    %c0_16 = arith.constant 0 : index
    %c0_17 = arith.constant 0 : index
    %c0_18 = arith.constant 0 : index
    %19 = vector.load %arg6[%c0_16, %c0_17, %c0_18] : memref<3x16x64xf32, #tpu.memory_space<vmem>>, vector<1x16x64xf32>
    %20 = vector.shape_cast %19 : vector<1x16x64xf32> to vector<16x64xf32>
    %cst_19 = arith.constant dense<0.000000e+00> : vector<16x128xf32>
    %21 = tpu.matmul %20, %18, %cst_19 {dimension_numbers = #tpu.dot_dimension_numbers<[1], [0], [0], [1], [0, 0, 1, 1], [], []>} : vector<16x64xf32>, vector<64x128xf32>, vector<16x128xf32> -> vector<16x128xf32>
    %c0_20 = arith.constant 0 : index
    %c0_21 = arith.constant 0 : index
    %c0_22 = arith.constant 0 : index
    %22 = vector.load %arg7[%c0_20, %c0_21, %c0_22] : memref<3x16x1xf32, #tpu.memory_space<vmem>>, vector<1x16x1xf32>
    %23 = vector.shape_cast %22 : vector<1x16x1xf32> to vector<16x1xf32>
    %24 = vector.broadcast %23 : vector<16x1xf32> to vector<16x128xf32>
    %25 = arith.addf %21, %24 : vector<16x128xf32>
    %26 = vector.extract_strided_slice %25 {offsets = [0, 0], sizes = [8, 128], strides = [1, 1]} : vector<16x128xf32> to vector<8x128xf32>
    %27 = vector.extract_strided_slice %25 {offsets = [8, 0], sizes = [8, 128], strides = [1, 1]} : vector<16x128xf32> to vector<8x128xf32>
    %28 = math.tanh %27 : vector<8x128xf32>
    %29 = math.exp %28 : vector<8x128xf32>
    %30 = arith.mulf %0, %29 : vector<8x128xf32>
    %31 = arith.addf %30, %26 : vector<8x128xf32>
    %c0_23 = arith.constant 0 : index
    %c0_24 = arith.constant 0 : index
    %c0_25 = arith.constant 0 : index
    %32 = vector.load %arg8[%c0_23, %c0_24, %c0_25] : memref<2x8x8xf32, #tpu.memory_space<vmem>>, vector<1x8x8xf32>
    %33 = vector.shape_cast %32 : vector<1x8x8xf32> to vector<8x8xf32>
    %cst_26 = arith.constant dense<0.000000e+00> : vector<8x128xf32>
    %34 = tpu.matmul %33, %31, %cst_26 {dimension_numbers = #tpu.dot_dimension_numbers<[1], [0], [0], [1], [0, 0, 1, 1], [], []>} : vector<8x8xf32>, vector<8x128xf32>, vector<8x128xf32> -> vector<8x128xf32>
    %c0_27 = arith.constant 0 : index
    %c0_28 = arith.constant 0 : index
    %c0_29 = arith.constant 0 : index
    %35 = vector.load %arg10[%c0_27, %c0_28, %c0_29] : memref<2x8x128xf32, #tpu.memory_space<vmem>>, vector<1x8x128xf32>
    %36 = vector.shape_cast %35 : vector<1x8x128xf32> to vector<8x128xf32>
    %37 = vector.shape_cast %34 : vector<8x128xf32> to vector<1x8x128xf32>
    tpu.vector_store %arg10[%c0_27, %c0_28, %c0_29], %37 {strides = array<i32>} : memref<2x8x128xf32, #tpu.memory_space<vmem>>, vector<1x8x128xf32>,
    %c1 = arith.constant 1 : index
    %c0_30 = arith.constant 0 : index
    %c0_31 = arith.constant 0 : index
    %38 = vector.load %arg2[%c1, %c0_30, %c0_31] : memref<3x64x8xf32, #tpu.memory_space<vmem>>, vector<1x64x8xf32>
    %39 = vector.shape_cast %38 : vector<1x64x8xf32> to vector<64x8xf32>
    %cst_32 = arith.constant dense<0.000000e+00> : vector<64x128xf32>
    %40 = tpu.matmul %39, %34, %cst_32 {dimension_numbers = #tpu.dot_dimension_numbers<[1], [0], [0], [1], [0, 0, 1, 1], [], []>} : vector<64x8xf32>, vector<8x128xf32>, vector<64x128xf32> -> vector<64x128xf32>
    %c1_33 = arith.constant 1 : index
    %c0_34 = arith.constant 0 : index
    %c0_35 = arith.constant 0 : index
    %41 = vector.load %arg3[%c1_33, %c0_34, %c0_35] : memref<3x64x1xf32, #tpu.memory_space<vmem>>, vector<1x64x1xf32>
    %42 = vector.shape_cast %41 : vector<1x64x1xf32> to vector<64x1xf32>
    %43 = vector.broadcast %42 : vector<64x1xf32> to vector<64x128xf32>
    %44 = arith.addf %40, %43 : vector<64x128xf32>
    %cst_36 = arith.constant 0.000000e+00 : f32
    %45 = vector.broadcast %cst_36 : f32 to vector<64x128xf32>
    %46 = arith.maximumf %44, %45 : vector<64x128xf32>
    %c1_37 = arith.constant 1 : index
    %c0_38 = arith.constant 0 : index
    %c0_39 = arith.constant 0 : index
    %47 = vector.load %arg4[%c1_37, %c0_38, %c0_39] : memref<3x64x64xf32, #tpu.memory_space<vmem>>, vector<1x64x64xf32>
    %48 = vector.shape_cast %47 : vector<1x64x64xf32> to vector<64x64xf32>
    %cst_40 = arith.constant dense<0.000000e+00> : vector<64x128xf32>
    %49 = tpu.matmul %48, %46, %cst_40 {dimension_numbers = #tpu.dot_dimension_numbers<[1], [0], [0], [1], [0, 0, 1, 1], [], []>} : vector<64x64xf32>, vector<64x128xf32>, vector<64x128xf32> -> vector<64x128xf32>
    %c1_41 = arith.constant 1 : index
    %c0_42 = arith.constant 0 : index
    %c0_43 = arith.constant 0 : index
    %50 = vector.load %arg5[%c1_41, %c0_42, %c0_43] : memref<3x64x1xf32, #tpu.memory_space<vmem>>, vector<1x64x1xf32>
    %51 = vector.shape_cast %50 : vector<1x64x1xf32> to vector<64x1xf32>
    %52 = vector.broadcast %51 : vector<64x1xf32> to vector<64x128xf32>
    %53 = arith.addf %49, %52 : vector<64x128xf32>
    %cst_44 = arith.constant 0.000000e+00 : f32
    %54 = vector.broadcast %cst_44 : f32 to vector<64x128xf32>
    %55 = arith.maximumf %53, %54 : vector<64x128xf32>
    %c1_45 = arith.constant 1 : index
    %c0_46 = arith.constant 0 : index
    %c0_47 = arith.constant 0 : index
    %56 = vector.load %arg6[%c1_45, %c0_46, %c0_47] : memref<3x16x64xf32, #tpu.memory_space<vmem>>, vector<1x16x64xf32>
    %57 = vector.shape_cast %56 : vector<1x16x64xf32> to vector<16x64xf32>
    %cst_48 = arith.constant dense<0.000000e+00> : vector<16x128xf32>
    %58 = tpu.matmul %57, %55, %cst_48 {dimension_numbers = #tpu.dot_dimension_numbers<[1], [0], [0], [1], [0, 0, 1, 1], [], []>} : vector<16x64xf32>, vector<64x128xf32>, vector<16x128xf32> -> vector<16x128xf32>
    %c1_49 = arith.constant 1 : index
    %c0_50 = arith.constant 0 : index
    %c0_51 = arith.constant 0 : index
    %59 = vector.load %arg7[%c1_49, %c0_50, %c0_51] : memref<3x16x1xf32, #tpu.memory_space<vmem>>, vector<1x16x1xf32>
    %60 = vector.shape_cast %59 : vector<1x16x1xf32> to vector<16x1xf32>
    %61 = vector.broadcast %60 : vector<16x1xf32> to vector<16x128xf32>
    %62 = arith.addf %58, %61 : vector<16x128xf32>
    %63 = vector.extract_strided_slice %62 {offsets = [0, 0], sizes = [8, 128], strides = [1, 1]} : vector<16x128xf32> to vector<8x128xf32>
    %64 = vector.extract_strided_slice %62 {offsets = [8, 0], sizes = [8, 128], strides = [1, 1]} : vector<16x128xf32> to vector<8x128xf32>
    %65 = math.tanh %64 : vector<8x128xf32>
    %66 = math.exp %65 : vector<8x128xf32>
    %67 = arith.mulf %34, %66 : vector<8x128xf32>
    %68 = arith.addf %67, %63 : vector<8x128xf32>
    %c1_52 = arith.constant 1 : index
    %c0_53 = arith.constant 0 : index
    %c0_54 = arith.constant 0 : index
    %69 = vector.load %arg8[%c1_52, %c0_53, %c0_54] : memref<2x8x8xf32, #tpu.memory_space<vmem>>, vector<1x8x8xf32>
    %70 = vector.shape_cast %69 : vector<1x8x8xf32> to vector<8x8xf32>
    %cst_55 = arith.constant dense<0.000000e+00> : vector<8x128xf32>
    %71 = tpu.matmul %70, %68, %cst_55 {dimension_numbers = #tpu.dot_dimension_numbers<[1], [0], [0], [1], [0, 0, 1, 1], [], []>} : vector<8x8xf32>, vector<8x128xf32>, vector<8x128xf32> -> vector<8x128xf32>
    %c1_56 = arith.constant 1 : index
    %c0_57 = arith.constant 0 : index
    %c0_58 = arith.constant 0 : index
    %72 = vector.load %arg10[%c1_56, %c0_57, %c0_58] : memref<2x8x128xf32, #tpu.memory_space<vmem>>, vector<1x8x128xf32>
    %73 = vector.shape_cast %72 : vector<1x8x128xf32> to vector<8x128xf32>
    %74 = vector.shape_cast %71 : vector<8x128xf32> to vector<1x8x128xf32>
    tpu.vector_store %arg10[%c1_56, %c0_57, %c0_58], %74 {strides = array<i32>} : memref<2x8x128xf32, #tpu.memory_space<vmem>>, vector<1x8x128xf32>,
    %c2 = arith.constant 2 : index
    %c0_59 = arith.constant 0 : index
    %c0_60 = arith.constant 0 : index
    %75 = vector.load %arg2[%c2, %c0_59, %c0_60] : memref<3x64x8xf32, #tpu.memory_space<vmem>>, vector<1x64x8xf32>
    %76 = vector.shape_cast %75 : vector<1x64x8xf32> to vector<64x8xf32>
    %cst_61 = arith.constant dense<0.000000e+00> : vector<64x128xf32>
    %77 = tpu.matmul %76, %71, %cst_61 {dimension_numbers = #tpu.dot_dimension_numbers<[1], [0], [0], [1], [0, 0, 1, 1], [], []>} : vector<64x8xf32>, vector<8x128xf32>, vector<64x128xf32> -> vector<64x128xf32>
    %c2_62 = arith.constant 2 : index
    %c0_63 = arith.constant 0 : index
    %c0_64 = arith.constant 0 : index
    %78 = vector.load %arg3[%c2_62, %c0_63, %c0_64] : memref<3x64x1xf32, #tpu.memory_space<vmem>>, vector<1x64x1xf32>
    %79 = vector.shape_cast %78 : vector<1x64x1xf32> to vector<64x1xf32>
    %80 = vector.broadcast %79 : vector<64x1xf32> to vector<64x128xf32>
    %81 = arith.addf %77, %80 : vector<64x128xf32>
    %cst_65 = arith.constant 0.000000e+00 : f32
    %82 = vector.broadcast %cst_65 : f32 to vector<64x128xf32>
    %83 = arith.maximumf %81, %82 : vector<64x128xf32>
    %c2_66 = arith.constant 2 : index
    %c0_67 = arith.constant 0 : index
    %c0_68 = arith.constant 0 : index
    %84 = vector.load %arg4[%c2_66, %c0_67, %c0_68] : memref<3x64x64xf32, #tpu.memory_space<vmem>>, vector<1x64x64xf32>
    %85 = vector.shape_cast %84 : vector<1x64x64xf32> to vector<64x64xf32>
    %cst_69 = arith.constant dense<0.000000e+00> : vector<64x128xf32>
    %86 = tpu.matmul %85, %83, %cst_69 {dimension_numbers = #tpu.dot_dimension_numbers<[1], [0], [0], [1], [0, 0, 1, 1], [], []>} : vector<64x64xf32>, vector<64x128xf32>, vector<64x128xf32> -> vector<64x128xf32>
    %c2_70 = arith.constant 2 : index
    %c0_71 = arith.constant 0 : index
    %c0_72 = arith.constant 0 : index
    %87 = vector.load %arg5[%c2_70, %c0_71, %c0_72] : memref<3x64x1xf32, #tpu.memory_space<vmem>>, vector<1x64x1xf32>
    %88 = vector.shape_cast %87 : vector<1x64x1xf32> to vector<64x1xf32>
    %89 = vector.broadcast %88 : vector<64x1xf32> to vector<64x128xf32>
    %90 = arith.addf %86, %89 : vector<64x128xf32>
    %cst_73 = arith.constant 0.000000e+00 : f32
    %91 = vector.broadcast %cst_73 : f32 to vector<64x128xf32>
    %92 = arith.maximumf %90, %91 : vector<64x128xf32>
    %c2_74 = arith.constant 2 : index
    %c0_75 = arith.constant 0 : index
    %c0_76 = arith.constant 0 : index
    %93 = vector.load %arg6[%c2_74, %c0_75, %c0_76] : memref<3x16x64xf32, #tpu.memory_space<vmem>>, vector<1x16x64xf32>
    %94 = vector.shape_cast %93 : vector<1x16x64xf32> to vector<16x64xf32>
    %cst_77 = arith.constant dense<0.000000e+00> : vector<16x128xf32>
    %95 = tpu.matmul %94, %92, %cst_77 {dimension_numbers = #tpu.dot_dimension_numbers<[1], [0], [0], [1], [0, 0, 1, 1], [], []>} : vector<16x64xf32>, vector<64x128xf32>, vector<16x128xf32> -> vector<16x128xf32>
    %c2_78 = arith.constant 2 : index
    %c0_79 = arith.constant 0 : index
    %c0_80 = arith.constant 0 : index
    %96 = vector.load %arg7[%c2_78, %c0_79, %c0_80] : memref<3x16x1xf32, #tpu.memory_space<vmem>>, vector<1x16x1xf32>
    %97 = vector.shape_cast %96 : vector<1x16x1xf32> to vector<16x1xf32>
    %98 = vector.broadcast %97 : vector<16x1xf32> to vector<16x128xf32>
    %99 = arith.addf %95, %98 : vector<16x128xf32>
    %100 = vector.extract_strided_slice %99 {offsets = [0, 0], sizes = [8, 128], strides = [1, 1]} : vector<16x128xf32> to vector<8x128xf32>
    %101 = vector.extract_strided_slice %99 {offsets = [8, 0], sizes = [8, 128], strides = [1, 1]} : vector<16x128xf32> to vector<8x128xf32>
    %102 = math.tanh %101 : vector<8x128xf32>
    %103 = math.exp %102 : vector<8x128xf32>
    %104 = arith.mulf %71, %103 : vector<8x128xf32>
    %105 = arith.addf %104, %100 : vector<8x128xf32>
    %c0_81 = arith.constant 0 : index
    %c0_82 = arith.constant 0 : index
    %106 = vector.load %arg9[%c0_81, %c0_82] : memref<8x128xf32, #tpu.memory_space<vmem>>, vector<8x128xf32>
    tpu.vector_store %arg9[%c0_81, %c0_82], %105 {strides = array<i32>} : memref<8x128xf32, #tpu.memory_space<vmem>>, vector<8x128xf32>,
    return
  }
  func.func @transform_0(%arg0: i32) -> (i32, i32) {
    %c0_i32 = arith.constant 0 : i32
    %c0_i32_0 = arith.constant 0 : i32
    return %c0_i32, %arg0 : i32, i32
  }
  func.func @transform_1(%arg0: i32) -> (i32, i32, i32) {
    %c0_i32 = arith.constant 0 : i32
    %c0_i32_0 = arith.constant 0 : i32
    %c0_i32_1 = arith.constant 0 : i32
    %c0_i32_2 = arith.constant 0 : i32
    return %c0_i32, %c0_i32_0, %c0_i32_1 : i32, i32, i32
  }
  func.func @transform_2(%arg0: i32) -> (i32, i32, i32) {
    %c0_i32 = arith.constant 0 : i32
    %c0_i32_0 = arith.constant 0 : i32
    %c0_i32_1 = arith.constant 0 : i32
    %c0_i32_2 = arith.constant 0 : i32
    return %c0_i32, %c0_i32_0, %c0_i32_1 : i32, i32, i32
  }
  func.func @transform_3(%arg0: i32) -> (i32, i32, i32) {
    %c0_i32 = arith.constant 0 : i32
    %c0_i32_0 = arith.constant 0 : i32
    %c0_i32_1 = arith.constant 0 : i32
    %c0_i32_2 = arith.constant 0 : i32
    return %c0_i32, %c0_i32_0, %c0_i32_1 : i32, i32, i32
  }
  func.func @transform_4(%arg0: i32) -> (i32, i32, i32) {
    %c0_i32 = arith.constant 0 : i32
    %c0_i32_0 = arith.constant 0 : i32
    %c0_i32_1 = arith.constant 0 : i32
    %c0_i32_2 = arith.constant 0 : i32
    return %c0_i32, %c0_i32_0, %c0_i32_1 : i32, i32, i32
  }
  func.func @transform_5(%arg0: i32) -> (i32, i32, i32) {
    %c0_i32 = arith.constant 0 : i32
    %c0_i32_0 = arith.constant 0 : i32
    %c0_i32_1 = arith.constant 0 : i32
    %c0_i32_2 = arith.constant 0 : i32
    return %c0_i32, %c0_i32_0, %c0_i32_1 : i32, i32, i32
  }
  func.func @transform_6(%arg0: i32) -> (i32, i32, i32) {
    %c0_i32 = arith.constant 0 : i32
    %c0_i32_0 = arith.constant 0 : i32
    %c0_i32_1 = arith.constant 0 : i32
    %c0_i32_2 = arith.constant 0 : i32
    return %c0_i32, %c0_i32_0, %c0_i32_1 : i32, i32, i32
  }
  func.func @transform_7(%arg0: i32) -> (i32, i32, i32) {
    %c0_i32 = arith.constant 0 : i32
    %c0_i32_0 = arith.constant 0 : i32
    %c0_i32_1 = arith.constant 0 : i32
    %c0_i32_2 = arith.constant 0 : i32
    return %c0_i32, %c0_i32_0, %c0_i32_1 : i32, i32, i32
  }
  func.func @transform_8(%arg0: i32) -> (i32, i32) {
    %c0_i32 = arith.constant 0 : i32
    %c0_i32_0 = arith.constant 0 : i32
    return %c0_i32, %arg0 : i32, i32
  }
  func.func @transform_9(%arg0: i32) -> (i32, i32, i32) {
    %c0_i32 = arith.constant 0 : i32
    %c0_i32_0 = arith.constant 0 : i32
    %c0_i32_1 = arith.constant 0 : i32
    return %c0_i32, %c0_i32_0, %arg0 : i32, i32, i32
  }
}

</mosaic_0001>

<bundles_post_ra>
// kernel: tpu_custom_call.1
= control target key start
LH: loop header
LB: loop body
LE: loop exit
PB: predicated region body
PF: predicated region fallthrough
CT: control target
= control target key end

     0   :  { %15 = vsyncpa [#allocation3], 0  ;;  %s3399_s0 = inlined_call_operand.vmem [shape: f32[8,256], index: 0, kind: input, shape index: {}]   ;;  %s3400_s1 = inlined_call_operand.vmem [shape: f32[3,64,8], index: 1, kind: input, shape index: {}]   ;;  %s3401_s2 = inlined_call_operand.vmem [shape: f32[3,64,1], index: 2, kind: input, shape index: {}]   ;;  %s3402_s3 = inlined_call_operand.vmem [shape: f32[3,64,64], index: 3, kind: input, shape index: {}]   ;;  %s3403_s4 = inlined_call_operand.vmem [shape: f32[3,64,1], index: 4, kind: input, shape index: {}]   ;;  %s3404_s5 = inlined_call_operand.vmem [shape: f32[3,16,64], index: 5, kind: input, shape index: {}]   ;;  %s3405_s6 = inlined_call_operand.vmem [shape: f32[3,16,1], index: 6, kind: input, shape index: {}]   ;;  %s3406_s7 = inlined_call_operand.vmem [shape: f32[2,8,8], index: 7, kind: input, shape index: {}]   ;;  %s3407_s8 = inlined_call_operand.hbm [shape: f32[8,256], index: 8, kind: output, shape index: {0}]   ;;  %s3408_s9 = inlined_call_operand.hbm [shape: f32[2,8,256], index: 9, kind: output, shape index: {1}]  }
   0x1   :  { %17 = vsyncpa [#allocation3 + $0x1], 0 }
   0x2   :  { %18 = vsyncpa [#allocation5], 0 }
   0x3   :  { %20 = vsyncpa [#allocation5 + $0x1], 0  ;;  %s2849_s30 = smov 0   ;;  %s2851_s10 = smov 0  }
   0x4   :  { %s2853_s11 = smov 0   ;;  %s2855_s12 = smov 0  }
   0x5 LB: > { %s2870_s13 = sadd.s32 4294967295, %s2789_s12   ;;  %s2090_s14 = sadd.s32 4294967294, %s2789_s12   ;;  %s2789_s12 = sphi %s2855_s12, %s3417_s12   ;;  %s2785_s11 = sphi %s2853_s11, %s3416_s11   ;;  %s2781_s10 = sphi %s2851_s10, %s3415_s10   ;;  %s2777_s30 = sphi %s2849_s30, %s3414_s30  }
   0x6   : > { %s2874_s15 = sadd.s32 1, %s2789_s12   ;;  %s206_s16 = sadd.s32 1, %s2785_s11 }
   0x7   : > { %s203_s17 = ssub.s32 %s2789_s12, %s2874_s15  ;;  %p216_p0 = scmp.ne.s32.totalorder %s2785_s11, %s2781_s10 }
   0x8   : > { %p204_p1 = scmp.eq.s32.totalorder %s203_s17, 0  ;;  %p217_p2 = scmp.eq.s32.totalorder %s2870_s13, 1 }
   0x9   : > { %p222_p3 = scmp.ne.s32.totalorder %s2781_s10, %s2777_s30  ;;  %p223_p4 = scmp.eq.s32.totalorder %s2090_s14, 1 }
   0xa   : > { %s2885_s18 = scalar_select %p204_p1, %s2785_s11, %s206_s16  }
   0xb   : > { %p2887_p5 = por %p217_p2, %p216_p0  ;;  %p2891_p6 = por %p223_p4, %p222_p3 }
   0xc   : > { %p2093_p7 = scmp.ge.s32.totalorder %s2789_s12, 1  ;;  %p295_p8 = scmp.lt.s32.totalorder %s2789_s12, 3 }
   0xe   : > { %p296_p9 = pnand %p2093_p7, %p295_p8 }
   0xf   : > { %v350_v0 = vld [vmem:[%s3401_s2 + $0x10] sm:$0xff] (!%p296_p9)  ;;  %v348_v1 = vld [vmem:[%s3401_s2] sm:$0xff] (!%p296_p9)  ;;  %p335_p10 = scmp.lt.s32.totalorder (!%p296_p9), %s2870_s13, 1  ;;  %vm396_vm0 = vcmask (!%p296_p9), 64512   ;;  %v2791_v2 = vmov (!%p296_p9), 0   ;;  %v351_v4 = vld [vmem:[%s3401_s2 + $0x18] sm:$0xff] (!%p296_p9) }
  0x10   : > { %299 = sbr.rel (%p296_p9) target bundleno = 2610 (0xa32), region = 52  ;;  %2682 = vset.pattern.permute.xlu1 (!%p296_p9), %v2791_v2  ;;  %2681 = vset.pattern.permute.xlu0 (!%p296_p9), %v2791_v2  ;;  %v340_v3 = vld [vmem:[%s3400_s1] sm:$0xff] (!%p296_p9)  ;;  %v349_v5 = vld [vmem:[%s3401_s2 + $0x8] sm:$0xff] (!%p296_p9)  ;;  %v342_v10 = vld [vmem:[%s3400_s1 + $0x10] sm:$0xff] (!%p296_p9)  ;;  %vm590_vm1 = vcmask (!%p296_p9), 523264   ;;  %vm2793_vm2 = vmmov (!%p296_p9), 0  }
  0x11   : > { %368 = vperm.xlu1 (!%p296_p9), %2682, %v350_v0   ;;  %358 = vperm.xlu0 (!%p296_p9), %2681, %v348_v1   ;;  %v341_v7 = vld [vmem:[%s3400_s1 + $0x8] sm:$0xff] (!%p296_p9)  ;;  %v352_v9 = vld [vmem:[%s3401_s2 + $0x20] sm:$0xff] (!%p296_p9)  ;;  %v343_v11 = vld [vmem:[%s3400_s1 + $0x18] sm:$0xff] (!%p296_p9)  ;;  %s3151_s14 = sand.u32 (!%p296_p9), 1, %s2781_s10   ;;  %s3409_s24 = sshll.u32 (!%p296_p9), %s2870_s13, 7 }
  0x12   : > { %2344 = vmatprep.mubr.msk.f32.mxu0 (!%p296_p9), %vm396_vm0, %v340_v3  ;;  %v353_v8 = vld [vmem:[%s3401_s2 + $0x28] sm:$0xff] (!%p296_p9)  ;;  %v355_v12 = vld [vmem:[%s3401_s2 + $0x38] sm:$0xff] (!%p296_p9)  ;;  %v354_v13 = vld [vmem:[%s3401_s2 + $0x30] sm:$0xff] (!%p296_p9)  ;;  %s2095_s16 = sshll.u32 (!%p296_p9), %s3151_s14, 4  ;;  %s3323_s28 = scalar_lea.hbm (!%p296_p9), %s3408_s9, %s3409_s24 }
  0x13   : > { %v344_v14 = vld [vmem:[%s3400_s1 + $0x20] sm:$0xff] (!%p296_p9)  ;;  %v345_v15 = vld [vmem:[%s3400_s1 + $0x28] sm:$0xff] (!%p296_p9)  ;;  %v346_v18 = vld [vmem:[%s3400_s1 + $0x30] sm:$0xff] (!%p296_p9)  ;;  %s3159_s22 = scalar_lea.vmem (!%p296_p9), [#allocation4], %s2095_s16  ;;  %s2794_s16 = smov (!%p296_p9), [#allocation4]  }
  0x14   : > { %v543_v16 = vld [vmem:[%s3403_s4 + $0x8] sm:$0xff] (!%p296_p9)  ;;  %v542_v17 = vld [vmem:[%s3403_s4] sm:$0xff] (!%p296_p9)  ;;  %v347_v19 = vld [vmem:[%s3400_s1 + $0x38] sm:$0xff] (!%p296_p9) }
  0x15   : > { %373 = vperm.xlu1 (!%p296_p9), %2682, %v351_v4   ;;  %363 = vperm.xlu0 (!%p296_p9), %2681, %v349_v5   ;;  %v545_v20 = vld [vmem:[%s3403_s4 + $0x18] sm:$0xff] (!%p296_p9)  ;;  %v544_v21 = vld [vmem:[%s3403_s4 + $0x10] sm:$0xff] (!%p296_p9)  ;;  %v547_v22 = vld [vmem:[%s3403_s4 + $0x28] sm:$0xff] (!%p296_p9) }
  0x16   : > { %v546_v23 = vld [vmem:[%s3403_s4 + $0x20] sm:$0xff] (!%p296_p9)  ;;  %v549_v24 = vld [vmem:[%s3403_s4 + $0x38] sm:$0xff] (!%p296_p9)  ;;  %v548_v25 = vld [vmem:[%s3403_s4 + $0x30] sm:$0xff] (!%p296_p9) }
  0x17   : > { %s336_s27 = scalar_select %p335_p10, %s2870_s13, 1  ;;  %v730_v26 = vld [vmem:[%s3405_s6] sm:$0xff]  ;;  %v731_v27 = vld [vmem:[%s3405_s6 + $0x8] sm:$0xff]  ;;  %v2127_v30 = vld [vmem:[%s3401_s2 + $0x58] sm:$0xff] }
  0x18   : > { %v2125_v28 = vld [vmem:[%s3401_s2 + $0x48] sm:$0xff]  ;;  %v2124_v29 = vld [vmem:[%s3401_s2 + $0x40] sm:$0xff]  ;;  %v2126_v31 = vld [vmem:[%s3401_s2 + $0x50] sm:$0xff] }
  0x19   : > { %s2096_s17 = sshll.u32 %s336_s27, 3  ;;  %383 = vperm.xlu1 %2682, %v353_v8   ;;  %378 = vperm.xlu0 %2681, %v352_v9   ;;  %v2129_v32 = vld [vmem:[%s3401_s2 + $0x68] sm:$0xff]  ;;  %v2128_v33 = vld [vmem:[%s3401_s2 + $0x60] sm:$0xff]  ;;  %v2131_v34 = vld [vmem:[%s3401_s2 + $0x78] sm:$0xff] }
  0x1a   : > { %s338_s23 = scalar_lea.vmem %s3399_s0, %s2096_s17  ;;  %v2130_v35 = vld [vmem:[%s3401_s2 + $0x70] sm:$0xff]  ;;  %v2149_v36 = vld [vmem:[%s3403_s4 + $0x48] sm:$0xff]  ;;  %v2148_v37 = vld [vmem:[%s3403_s4 + $0x40] sm:$0xff] }
  0x1b   : > { %v2918_v6 = vld [vmem:[%s338_s23] sm:$0xff]  ;;  %v2151_v38 = vld [vmem:[%s3403_s4 + $0x58] sm:$0xff]  ;;  %v2150_v39 = vld [vmem:[%s3403_s4 + $0x50] sm:$0xff]  ;;  %s1996_s23 = sshll.u32 %s3159_s22, 4  ;;  %s3316_s23 = int_to_ptr.vmem [resolvable:$true] %s1996_s23 }
  0x1c   : > { %2342 = vmatprep.subr.mxu0 %v2918_v6  ;;  %v2153_v40 = vld [vmem:[%s3403_s4 + $0x68] sm:$0xff]  ;;  %v2152_v41 = vld [vmem:[%s3403_s4 + $0x60] sm:$0xff]  ;;  %v2155_v42 = vld [vmem:[%s3403_s4 + $0x78] sm:$0xff]  ;;  %s2695_s27 = scalar_lea.vmem %s3316_s23, 256 }
  0x1d   : > { %2343 = vmatpush3.msra.mxu0 %v2918_v6  ;;  %393 = vperm.xlu1 %2682, %v355_v12   ;;  %v2154_v43 = vld [vmem:[%s3403_s4 + $0x70] sm:$0xff]  ;;  %v2167_v45 = vld [vmem:[%s3405_s6 + $0x18] sm:$0xff]  ;;  %v2182_v46 = vld [vmem:[%s3401_s2 + $0x88] sm:$0xff]  ;;  %p2696_p11 = scmp.ne.s32.totalorder %s3316_s23, %s2695_s27 }
  0x1e   : > { %2345 = vmatmul.mubr.msk.f32.vlgmr.msra.gmra.mrb[0].mxu0 %vm396_vm0, %v341_v7  ;;  %388 = vperm.xlu0 %2681, %v354_v13   ;;  %v2166_v44 = vld [vmem:[%s3405_s6 + $0x10] sm:$0xff]  ;;  %v2181_v47 = vld [vmem:[%s3401_s2 + $0x80] sm:$0xff]  ;;  %v2184_v48 = vld [vmem:[%s3401_s2 + $0x98] sm:$0xff] }
  0x1f   : > { %2347 = vmatprep.mubr.msk.f32.mxu0 %vm396_vm0, %v342_v10  ;;  %v2183_v49 = vld [vmem:[%s3401_s2 + $0x90] sm:$0xff]  ;;  %v2186_v50 = vld [vmem:[%s3401_s2 + $0xa8] sm:$0xff]  ;;  %v2185_v51 = vld [vmem:[%s3401_s2 + $0xa0] sm:$0xff]  ;;  %p2697_p12 = pnand %p2696_p11, %p2887_p5 }
  0x20   : > { %v2188_v52 = vld [vmem:[%s3401_s2 + $0xb8] sm:$0xff]  ;;  %v2187_v53 = vld [vmem:[%s3401_s2 + $0xb0] sm:$0xff]  ;;  %v2206_v54 = vld [vmem:[%s3403_s4 + $0x88] sm:$0xff] }
  0x21   : > { %557 = vperm.xlu1 %2682, %v543_v16   ;;  %v2205_v55 = vld [vmem:[%s3403_s4 + $0x80] sm:$0xff]  ;;  %v2208_v56 = vld [vmem:[%s3403_s4 + $0x98] sm:$0xff]  ;;  %v2207_v57 = vld [vmem:[%s3403_s4 + $0x90] sm:$0xff]  ;;  %p2698_p13 = pneg %p2697_p12 }
  0x22   : > { %2348 = vmatmul.mubr.msk.f32.gmra.mrb[2].mxu0 %vm396_vm0, %v343_v11  ;;  %552 = vperm.xlu0 %2681, %v542_v17   ;;  %v2210_v58 = vld [vmem:[%s3403_s4 + $0xa8] sm:$0xff]  ;;  %v2209_v59 = vld [vmem:[%s3403_s4 + $0xa0] sm:$0xff]  ;;  %v2212_v60 = vld [vmem:[%s3403_s4 + $0xb8] sm:$0xff] }
  0x23   : > { %2350 = vmatprep.mubr.msk.f32.mxu0 %vm396_vm0, %v344_v14  ;;  %v2211_v61 = vld [vmem:[%s3403_s4 + $0xb0] sm:$0xff]  ;;  %v2223_v62 = vld [vmem:[%s3405_s6 + $0x20] sm:$0xff]  ;;  %v2224_v63 = vld [vmem:[%s3405_s6 + $0x28] sm:$0xff] }
  0x24   : > { %v534_v0 = vld [vmem:[%s3402_s3] sm:$0xff] }
  0x25   : > { %567 = vperm.xlu1 %2682, %v545_v20   ;;  %2372 = vmatprep.mubr.msk.f32.mxu1 %vm590_vm1, %v534_v0 }
  0x26   : > { %2351 = vmatmul.mubr.msk.f32.gmra.mrb[4].mxu0 %vm396_vm0, %v345_v15  ;;  %562 = vperm.xlu0 %2681, %v544_v21  }
  0x27   : > { %2353 = vmatprep.mubr.msk.f32.mxu0 %vm396_vm0, %v346_v18 }
  0x29   : > { %577 = vperm.xlu1 %2682, %v547_v22  }
  0x2a   : > { %2354 = vmatmul.mubr.msk.f32.gmra.mrb[6].mxu0 %vm396_vm0, %v347_v19  ;;  %572 = vperm.xlu0 %2681, %v546_v23  }
  0x2d   : > { %587 = vperm.xlu1 %2682, %v549_v24  }
  0x2e   : > { %582 = vperm.xlu0 %2681, %v548_v25  }
  0x31   : > { %734 = vperm.xlu1 %2682, %v730_v26  }
  0x32   : > { %739 = vperm.xlu0 %2681, %v731_v27  }
  0x35   : > { %928 = vperm.xlu1 %2682, %v2125_v28  }
  0x36   : > { %923 = vperm.xlu0 %2681, %v2124_v29  }
  0x39   : > { %938 = vperm.xlu1 %2682, %v2127_v30  }
  0x3a   : > { %933 = vperm.xlu0 %2681, %v2126_v31  }
  0x3d   : > { %948 = vperm.xlu1 %2682, %v2129_v32  }
  0x3e   : > { %943 = vperm.xlu0 %2681, %v2128_v33  }
  0x41   : > { %958 = vperm.xlu1 %2682, %v2131_v34  }
  0x42   : > { %953 = vperm.xlu0 %2681, %v2130_v35  }
  0x45   : > { %1123 = vperm.xlu1 %2682, %v2149_v36  }
  0x46   : > { %1118 = vperm.xlu0 %2681, %v2148_v37  }
  0x49   : > { %1133 = vperm.xlu1 %2682, %v2151_v38   ;;  %v535_v38 = vld [vmem:[%s3402_s3 + $0x8] sm:$0xff] }
  0x4a   : > { %1128 = vperm.xlu0 %2681, %v2150_v39   ;;  %v536_v39 = vld [vmem:[%s3402_s3 + $0x10] sm:$0xff] }
  0x4d   : > { %1143 = vperm.xlu1 %2682, %v2153_v40   ;;  %v537_v40 = vld [vmem:[%s3402_s3 + $0x18] sm:$0xff] }
  0x4e   : > { %1138 = vperm.xlu0 %2681, %v2152_v41   ;;  %v538_v41 = vld [vmem:[%s3402_s3 + $0x20] sm:$0xff] }
  0x51   : > { %1153 = vperm.xlu1 %2682, %v2155_v42   ;;  %v539_v42 = vld [vmem:[%s3402_s3 + $0x28] sm:$0xff] }
  0x52   : > { %1148 = vperm.xlu0 %2681, %v2154_v43   ;;  %v540_v43 = vld [vmem:[%s3402_s3 + $0x30] sm:$0xff] }
  0x55   : > { %1301 = vperm.xlu1 %2682, %v2166_v44   ;;  %v541_v44 = vld [vmem:[%s3402_s3 + $0x38] sm:$0xff] }
  0x56   : > { %1306 = vperm.xlu0 %2681, %v2167_v45   ;;  %v728_v45 = vld [vmem:[%s3404_s5] sm:$0xff] }
  0x57   : > { %2400 = vmatprep.mubr.msk.f32.mxu0 %vm590_vm1, %v728_v45 }
  0x59   : > { %1497 = vperm.xlu1 %2682, %v2182_v46  }
  0x5a   : > { %1492 = vperm.xlu0 %2681, %v2181_v47  }
  0x5d   : > { %1507 = vperm.xlu1 %2682, %v2184_v48  }
  0x5e   : > { %1502 = vperm.xlu0 %2681, %v2183_v49  }
  0x61   : > { %1517 = vperm.xlu1 %2682, %v2186_v50  }
  0x62   : > { %1512 = vperm.xlu0 %2681, %v2185_v51  }
  0x65   : > { %1527 = vperm.xlu1 %2682, %v2188_v52  }
  0x66   : > { %1522 = vperm.xlu0 %2681, %v2187_v53  }
  0x69   : > { %1692 = vperm.xlu1 %2682, %v2206_v54  }
  0x6a   : > { %1687 = vperm.xlu0 %2681, %v2205_v55  }
  0x6d   : > { %1702 = vperm.xlu1 %2682, %v2208_v56  }
  0x6e   : > { %1697 = vperm.xlu0 %2681, %v2207_v57  }
  0x71   : > { %1712 = vperm.xlu1 %2682, %v2210_v58  }
  0x72   : > { %1707 = vperm.xlu0 %2681, %v2209_v59  }
  0x75   : > { %1722 = vperm.xlu1 %2682, %v2212_v60  }
  0x76   : > { %1717 = vperm.xlu0 %2681, %v2211_v61  }
  0x79   : > { %1870 = vperm.xlu1 %2682, %v2223_v62  }
  0x7a   : > { %1875 = vperm.xlu0 %2681, %v2224_v63  }
  0x90   : > { %v369_v1 = vpop.permute.xlu1 %368  ;;  %v359_v2 = vpop.permute.xlu0 %358 }
  0x94   : > { %v374_v3 = vpop.permute.xlu1 %373  ;;  %v364_v4 = vpop.permute.xlu0 %363 }
  0x98   : > { %v384_v14 = vpop.permute.xlu1 %383  ;;  %v379_v19 = vpop.permute.xlu0 %378 }
  0x9c   : > { %v394_v27 = vpop.permute.xlu1 %393 }
  0x9d   : > { %v389_v31 = vpop.permute.xlu0 %388 }
  0xa0   : > { %v558_v46 = vpop.permute.xlu1 %557 }
  0xa1   : > { %v553_v47 = vpop.permute.xlu0 %552 }
  0xa4   : > { %v568_v48 = vpop.permute.xlu1 %567 }
  0xa5   : > { %v563_v50 = vpop.permute.xlu0 %562 }
  0xa8   : > { %v578_v59 = vpop.permute.xlu1 %577 }
  0xa9   : > { %v573_v62 = vpop.permute.xlu0 %572 }
  0xf1   : > { %v2346_v5 = vpop.f32.mrb[0].mxu0 }
  0xf2   : > { %v493_v7 = vadd.f32 %v2346_v5, %v364_v4  ;;  %v487_v8 = vpop.f32.mrb[1].mxu0 }
  0xf3   : > { %v488_v10 = vadd.f32 %v487_v8, %v359_v2  ;;  %v588_v8 = vpop.permute.xlu1 %587 }
  0xf4   : > { %v527_v9 = vmax.f32 %v493_v7, 0.0 }
  0xf5   : > { %v2349_v11 = vpop.f32.mrb[2].mxu0  ;;  %v526_v12 = vmax.f32 %v488_v10, 0.0 }
  0xf6   : > { %v503_v13 = vadd.f32 %v2349_v11, %v374_v3  ;;  %v497_v15 = vpop.f32.mrb[3].mxu0  ;;  %v583_v11 = vpop.permute.xlu0 %582 }
  0xf7   : > { %v498_v17 = vadd.f32 %v497_v15, %v369_v1  ;;  %v2535_v18 = vpack.c.bf16 %v527_v9, %v526_v12 }
  0xf8   : > { %v529_v16 = vmax.f32 %v503_v13, 0.0 }
  0xf9   : > { %v2352_v20 = vpop.f32.mrb[4].mxu0  ;;  %v528_v21 = vmax.f32 %v498_v17, 0.0  ;;  %2536 = vmatprep.subr.bf16.mxu1 %v2535_v18 }
  0xfa   : > { %v513_v22 = vadd.f32 %v2352_v20, %v384_v14  ;;  %v507_v23 = vpop.f32.mrb[5].mxu0  ;;  %2538 = vmatpush3.bf16.msra.mxu1 %v2535_v18  ;;  %v2792_v20 = vmov 0.0  }
  0xfb   : > { %v2539_v24 = vpack.c.bf16 %v529_v16, %v528_v21  ;;  %v508_v26 = vadd.f32 %v507_v23, %v379_v19  ;;  %v729_v19 = vld [vmem:[%s3404_s5 + $0x8] sm:$0xff]  ;;  %v740_v21 = vpop.permute.xlu0 %739 }
  0xfc   : > { %v531_v25 = vmax.f32 %v513_v22, 0.0 }
  0xfd   : > { %v2355_v28 = vpop.f32.mrb[6].mxu0  ;;  %v530_v29 = vmax.f32 %v508_v26, 0.0  ;;  %2540 = vmatprep.subr.bf16.mxu1 %v2539_v24 }
  0xfe   : > { %v523_v30 = vadd.f32 %v2355_v28, %v394_v27  ;;  %v517_v32 = vpop.f32.mrb[7].mxu0  ;;  %2542 = vmatpush3.bf16.msra.mxu1 %v2539_v24  ;;  %v735_v28 = vpop.permute.xlu1 %734 }
  0xff   : > { %v2543_v33 = vpack.c.bf16 %v531_v25, %v530_v29  ;;  %v518_v35 = vadd.f32 %v517_v32, %v389_v31  ;;  %v828_v32 = vld [vmem:[%s3406_s7] sm:$0xff] }
 0x100   : > { %v533_v34 = vmax.f32 %v523_v30, 0.0 }
 0x101   : > { %v532_v36 = vmax.f32 %v518_v35, 0.0  ;;  %2544 = vmatprep.subr.bf16.mxu1 %v2543_v33 }
 0x102   : > { %2546 = vmatpush3.bf16.msra.mxu1 %v2543_v33  ;;  %v2116_v33 = vld [vmem:[%s3400_s1 + $0x40] sm:$0xff] }
 0x103   : > { %v2547_v37 = vpack.c.bf16 %v533_v34, %v532_v36  ;;  %v2118_v36 = vld [vmem:[%s3400_s1 + $0x50] sm:$0xff] }
 0x105   : > { %2548 = vmatprep.subr.bf16.mxu1 %v2547_v37 }
 0x106   : > { %2550 = vmatpush3.bf16.msra.mxu1 %v2547_v37  ;;  %v2119_v37 = vld [vmem:[%s3400_s1 + $0x58] sm:$0xff] }
 0x109   : > { %2373 = vmatmul.mubr.msk.f32.vlgmr.msra.gmra.mrb[0].mxu1 %vm590_vm1, %v535_v38  ;;  %v2120_v38 = vld [vmem:[%s3400_s1 + $0x60] sm:$0xff] }
 0x10a   : > { %2375 = vmatprep.mubr.msk.f32.mxu1 %vm590_vm1, %v536_v39  ;;  %v2121_v39 = vld [vmem:[%s3400_s1 + $0x68] sm:$0xff] }
 0x10d   : > { %2376 = vmatmul.mubr.msk.f32.gmra.mrb[2].mxu1 %vm590_vm1, %v537_v40  ;;  %v2122_v40 = vld [vmem:[%s3400_s1 + $0x70] sm:$0xff] }
 0x10e   : > { %2378 = vmatprep.mubr.msk.f32.mxu1 %vm590_vm1, %v538_v41  ;;  %v2123_v41 = vld [vmem:[%s3400_s1 + $0x78] sm:$0xff] }
 0x111   : > { %2379 = vmatmul.mubr.msk.f32.gmra.mrb[4].mxu1 %vm590_vm1, %v539_v42  ;;  %v2140_v42 = vld [vmem:[%s3402_s3 + $0x40] sm:$0xff] }
 0x112   : > { %2381 = vmatprep.mubr.msk.f32.mxu1 %vm590_vm1, %v540_v43  ;;  %v929_v43 = vpop.permute.xlu1 %928 }
 0x115   : > { %2382 = vmatmul.mubr.msk.f32.gmra.mrb[6].mxu1 %vm590_vm1, %v541_v44  ;;  %v924_v44 = vpop.permute.xlu0 %923 }
 0x116   : > { %2438 = vmatprep.mubr.msk.f32.mxu1 %vm590_vm1, %v2140_v42  ;;  %v939_v45 = vpop.permute.xlu1 %938 }
 0x1dc   : > { %v2374_v49 = vpop.f32.mrb[0].mxu1 }
 0x1dd   : > { %v687_v51 = vadd.f32 %v2374_v49, %v558_v46  ;;  %v681_v52 = vpop.f32.mrb[1].mxu1 }
 0x1de   : > { %v682_v53 = vadd.f32 %v681_v52, %v553_v47  ;;  %v934_v47 = vpop.permute.xlu0 %933 }
 0x1df   : > { %v721_v54 = vmax.f32 %v687_v51, 0.0 }
 0x1e0   : > { %v720_v55 = vmax.f32 %v682_v53, 0.0  ;;  %v2377_v56 = vpop.f32.mrb[2].mxu1 }
 0x1e1   : > { %v697_v57 = vadd.f32 %v2377_v56, %v568_v48  ;;  %v691_v58 = vpop.f32.mrb[3].mxu1  ;;  %v949_v56 = vpop.permute.xlu1 %948 }
 0x1e2   : > { %v2551_v60 = vpack.c.bf16 %v721_v54, %v720_v55  ;;  %v692_v61 = vadd.f32 %v691_v58, %v563_v50 }
 0x1e3   : > { %v723_v63 = vmax.f32 %v697_v57, 0.0 }
 0x1e4   : > { %v722_v0 = vmax.f32 %v692_v61, 0.0  ;;  %v2380_v1 = vpop.f32.mrb[4].mxu1  ;;  %2552 = vmatprep.subr.bf16.mxu0 %v2551_v60 }
 0x1e5   : > { %v707_v2 = vadd.f32 %v2380_v1, %v578_v59  ;;  %v701_v3 = vpop.f32.mrb[5].mxu1  ;;  %2554 = vmatpush3.bf16.msra.mxu0 %v2551_v60  ;;  %v944_v59 = vpop.permute.xlu0 %943 }
 0x1e6   : > { %v2555_v4 = vpack.c.bf16 %v723_v63, %v722_v0  ;;  %v702_v5 = vadd.f32 %v701_v3, %v573_v62 }
 0x1e7   : > { %v725_v7 = vmax.f32 %v707_v2, 0.0 }
 0x1e8   : > { %v724_v9 = vmax.f32 %v702_v5, 0.0  ;;  %v2383_v10 = vpop.f32.mrb[6].mxu1  ;;  %2556 = vmatprep.subr.bf16.mxu0 %v2555_v4 }
 0x1e9   : > { %v717_v12 = vadd.f32 %v2383_v10, %v588_v8  ;;  %v711_v13 = vpop.f32.mrb[7].mxu1  ;;  %2558 = vmatpush3.bf16.msra.mxu0 %v2555_v4  ;;  %v959_v4 = vpop.permute.xlu1 %958 }
 0x1ea   : > { %v2559_v14 = vpack.c.bf16 %v725_v7, %v724_v9  ;;  %v712_v15 = vadd.f32 %v711_v13, %v583_v11  ;;  %v954_v8 = vpop.permute.xlu0 %953 }
 0x1eb   : > { %v727_v16 = vmax.f32 %v717_v12, 0.0 }
 0x1ec   : > { %v726_v17 = vmax.f32 %v712_v15, 0.0  ;;  %2560 = vmatprep.subr.bf16.mxu0 %v2559_v14 }
 0x1ed   : > { %2562 = vmatpush3.bf16.msra.mxu0 %v2559_v14 }
 0x1ee   : > { %v2563_v18 = vpack.c.bf16 %v727_v16, %v726_v17  ;;  %v2141_v16 = vld [vmem:[%s3402_s3 + $0x48] sm:$0xff]  ;;  %v2142_v17 = vld [vmem:[%s3402_s3 + $0x50] sm:$0xff] }
 0x1f0   : > { %2564 = vmatprep.subr.bf16.mxu0 %v2563_v18 }
 0x1f1   : > { %2566 = vmatpush3.bf16.msra.mxu0 %v2563_v18  ;;  %v2143_v18 = vld [vmem:[%s3402_s3 + $0x58] sm:$0xff] }
 0x1f2   : > { %2403 = vmatprep.subr.mxu0 %v2792_v20 }
 0x1f4   : > { %2401 = vmatmul.mubr.msk.f32.vlgmr.msra.gmra.mrb[8].mxu0 %vm590_vm1, %v729_v19  ;;  %v2144_v19 = vld [vmem:[%s3402_s3 + $0x60] sm:$0xff] }
 0x1f5   : > { %2405 = vmatprep.mubr.msk.f32.mxu0 %vm2793_vm2, %v2792_v20 }
 0x2c7   : > { %v2402_v22 = vpop.f32.mrb[8].mxu0 }
 0x2c8   : > { %v820_v23 = vadd.f32 %v2402_v22, %v740_v21  ;;  %v814_v24 = vpop.f32.mrb[9].mxu0  ;;  %v2146_v21 = vld [vmem:[%s3402_s3 + $0x70] sm:$0xff]  ;;  %v2147_v22 = vld [vmem:[%s3402_s3 + $0x78] sm:$0xff] }
 0x2c9   : > { %v815_v29 = vadd.f32 %v814_v24, %v735_v28  ;;  %v1124_v24 = vpop.permute.xlu1 %1123 }
 0x2ca   : > { %2683 = vtanh.f32 %v820_v23  ;;  %v2164_v23 = vld [vmem:[%s3404_s5 + $0x10] sm:$0xff] }
 0x2d4   : > { %v2684_v25 = vpop.eup %2683 }
 0x2d5   : > { %v824_v26 = vmul.f32 1.442695, %v2684_v25  ;;  %v1119_v25 = vpop.permute.xlu0 %1118 }
 0x2d7   : > { %2685 = vpow2.f32 %v824_v26  ;;  %v1134_v26 = vpop.permute.xlu1 %1133 }
 0x2d9   : > { %v1129_v28 = vpop.permute.xlu0 %1128 }
 0x2e1   : > { %v2686_v27 = vpop.eup %2685 }
 0x2e2   : > { %v826_v30 = vmul.f32 %v2686_v27, %v2918_v6  ;;  %v2117_v6 = vld [vmem:[%s3400_s1 + $0x48] sm:$0xff] }
 0x2e4   : > { %v827_v31 = vadd.f32 %v826_v30, %v815_v29 }
 0x2e6   : > { %2404 = vmatpush3.msra.mxu0 %v827_v31 }
 0x2e7   : > { %2406 = vmatmul.mubr.msk.f32.vlgmr.msra.gmra.mrb[10].mxu0 %vm396_vm0, %v828_v32 }
 0x2e8   : > { %2410 = vmatprep.mubr.msk.f32.mxu0 %vm396_vm0, %v2116_v33 }
 0x3ba   : > { %v3154_v34 = vpop.f32.mrb[10].mxu0 }
 0x3bb   : > { %902 = vst [vmem:[%s3159_s22] sm:$0xff] %v3154_v34  ;;  %v2407_v35 = vpop.f32.mrb[11].mxu0  ;;  %2408 = vmatprep.subr.mxu0 %v3154_v34 }
 0x3bc   : > { %2409 = vmatpush3.msra.mxu0 %v3154_v34 }
 0x3bd   : > { %2411 = vmatmul.mubr.msk.f32.vlgmr.msra.gmra.mrb[12].mxu0 %vm396_vm0, %v2117_v6  ;;  %2469 = vmatprep.subr.mxu0 %v2792_v20 }
 0x3be   : > { %2413 = vmatprep.mubr.msk.f32.mxu0 %vm396_vm0, %v2118_v36 }
 0x3c1   : > { %2414 = vmatmul.mubr.msk.f32.gmra.mrb[14].mxu0 %vm396_vm0, %v2119_v37  ;;  %v1144_v37 = vpop.permute.xlu1 %1143 }
 0x3c2   : > { %2416 = vmatprep.mubr.msk.f32.mxu0 %vm396_vm0, %v2120_v38 }
 0x3c5   : > { %2417 = vmatmul.mubr.msk.f32.gmra.mrb[16].mxu0 %vm396_vm0, %v2121_v39 }
 0x3c6   : > { %2419 = vmatprep.mubr.msk.f32.mxu0 %vm396_vm0, %v2122_v40  ;;  %v1139_v40 = vpop.permute.xlu0 %1138 }
 0x3c9   : > { %2420 = vmatmul.mubr.msk.f32.gmra.mrb[18].mxu0 %vm396_vm0, %v2123_v41 }
 0x3ca   : > { %2471 = vmatprep.mubr.msk.f32.mxu0 %vm2793_vm2, %v2792_v20  ;;  %v2145_v20 = vld [vmem:[%s3402_s3 + $0x68] sm:$0xff] }
 0x490   : > { %v2412_v46 = vpop.f32.mrb[12].mxu0 }
 0x491   : > { %v1057_v48 = vadd.f32 %v2412_v46, %v929_v43  ;;  %v1051_v49 = vpop.f32.mrb[13].mxu0 }
 0x492   : > { %v1052_v50 = vadd.f32 %v1051_v49, %v924_v44  ;;  %v1154_v49 = vpop.permute.xlu1 %1153 }
 0x493   : > { %v1091_v51 = vmax.f32 %v1057_v48, 0.0 }
 0x494   : > { %v1090_v52 = vmax.f32 %v1052_v50, 0.0  ;;  %v2415_v53 = vpop.f32.mrb[14].mxu0 }
 0x495   : > { %v1067_v54 = vadd.f32 %v2415_v53, %v939_v45  ;;  %v1061_v55 = vpop.f32.mrb[15].mxu0 }
 0x496   : > { %v2567_v57 = vpack.c.bf16 %v1091_v51, %v1090_v52  ;;  %v1062_v58 = vadd.f32 %v1061_v55, %v934_v47  ;;  %v1149_v52 = vpop.permute.xlu0 %1148 }
 0x497   : > { %v1093_v60 = vmax.f32 %v1067_v54, 0.0 }
 0x498   : > { %v1092_v61 = vmax.f32 %v1062_v58, 0.0  ;;  %v2418_v62 = vpop.f32.mrb[16].mxu0  ;;  %2568 = vmatprep.subr.bf16.mxu1 %v2567_v57 }
 0x499   : > { %v1077_v63 = vadd.f32 %v2418_v62, %v949_v56  ;;  %v1071_v0 = vpop.f32.mrb[17].mxu0  ;;  %2570 = vmatpush3.bf16.msra.mxu1 %v2567_v57 }
 0x49a   : > { %v2571_v1 = vpack.c.bf16 %v1093_v60, %v1092_v61  ;;  %v1072_v2 = vadd.f32 %v1071_v0, %v944_v59  ;;  %v2165_v60 = vld [vmem:[%s3404_s5 + $0x18] sm:$0xff]  ;;  %v1307_v61 = vpop.permute.xlu0 %1306 }
 0x49b   : > { %v1095_v3 = vmax.f32 %v1077_v63, 0.0 }
 0x49c   : > { %v1094_v5 = vmax.f32 %v1072_v2, 0.0  ;;  %v2421_v7 = vpop.f32.mrb[18].mxu0  ;;  %2572 = vmatprep.subr.bf16.mxu1 %v2571_v1 }
 0x49d   : > { %v1087_v9 = vadd.f32 %v2421_v7, %v959_v4  ;;  %v1081_v10 = vpop.f32.mrb[19].mxu0  ;;  %2574 = vmatpush3.bf16.msra.mxu1 %v2571_v1  ;;  %v1302_v4 = vpop.permute.xlu1 %1301 }
 0x49e   : > { %v2575_v11 = vpack.c.bf16 %v1095_v3, %v1094_v5  ;;  %v1082_v12 = vadd.f32 %v1081_v10, %v954_v8  ;;  %v2173_v10 = vld [vmem:[%s3400_s1 + $0x80] sm:$0xff] }
 0x49f   : > { %v1097_v13 = vmax.f32 %v1087_v9, 0.0  ;;  %v2170_v9 = vld [vmem:[%s3406_s7 + $0x8] sm:$0xff] }
 0x4a0   : > { %v1096_v14 = vmax.f32 %v1082_v12, 0.0  ;;  %2576 = vmatprep.subr.bf16.mxu1 %v2575_v11  ;;  %v2175_v12 = vld [vmem:[%s3400_s1 + $0x90] sm:$0xff] }
 0x4a1   : > { %2578 = vmatpush3.bf16.msra.mxu1 %v2575_v11 }
 0x4a2   : > { %v2579_v15 = vpack.c.bf16 %v1097_v13, %v1096_v14  ;;  %v2176_v14 = vld [vmem:[%s3400_s1 + $0x98] sm:$0xff] }
 0x4a4   : > { %2580 = vmatprep.subr.bf16.mxu1 %v2579_v15 }
 0x4a5   : > { %2582 = vmatpush3.bf16.msra.mxu1 %v2579_v15  ;;  %v2177_v15 = vld [vmem:[%s3400_s1 + $0xa0] sm:$0xff] }
 0x4a8   : > { %2439 = vmatmul.mubr.msk.f32.vlgmr.msra.gmra.mrb[8].mxu1 %vm590_vm1, %v2141_v16  ;;  %v2178_v16 = vld [vmem:[%s3400_s1 + $0xa8] sm:$0xff] }
 0x4a9   : > { %2441 = vmatprep.mubr.msk.f32.mxu1 %vm590_vm1, %v2142_v17  ;;  %v2179_v17 = vld [vmem:[%s3400_s1 + $0xb0] sm:$0xff] }
 0x4ac   : > { %2442 = vmatmul.mubr.msk.f32.gmra.mrb[10].mxu1 %vm590_vm1, %v2143_v18  ;;  %v2180_v18 = vld [vmem:[%s3400_s1 + $0xb8] sm:$0xff] }
 0x4ad   : > { %2444 = vmatprep.mubr.msk.f32.mxu1 %vm590_vm1, %v2144_v19  ;;  %v2197_v19 = vld [vmem:[%s3402_s3 + $0x80] sm:$0xff] }
 0x4b0   : > { %2445 = vmatmul.mubr.msk.f32.gmra.mrb[12].mxu1 %vm590_vm1, %v2145_v20  ;;  %v1498_v20 = vpop.permute.xlu1 %1497 }
 0x4b1   : > { %2447 = vmatprep.mubr.msk.f32.mxu1 %vm590_vm1, %v2146_v21  ;;  %v1493_v21 = vpop.permute.xlu0 %1492 }
 0x4b4   : > { %2448 = vmatmul.mubr.msk.f32.gmra.mrb[14].mxu1 %vm590_vm1, %v2147_v22  ;;  %v1508_v22 = vpop.permute.xlu1 %1507 }
 0x4b5   : > { %2466 = vmatprep.mubr.msk.f32.mxu1 %vm590_vm1, %v2164_v23 }
 0x57b   : > { %v2440_v27 = vpop.f32.mrb[8].mxu1 }
 0x57c   : > { %v1252_v29 = vadd.f32 %v2440_v27, %v1124_v24  ;;  %v1246_v30 = vpop.f32.mrb[9].mxu1  ;;  %v1503_v24 = vpop.permute.xlu0 %1502 }
 0x57d   : > { %v1247_v31 = vadd.f32 %v1246_v30, %v1119_v25 }
 0x57e   : > { %v1286_v32 = vmax.f32 %v1252_v29, 0.0 }
 0x57f   : > { %v1285_v33 = vmax.f32 %v1247_v31, 0.0  ;;  %v2443_v6 = vpop.f32.mrb[10].mxu1 }
 0x580   : > { %v1262_v35 = vadd.f32 %v2443_v6, %v1134_v26  ;;  %v1256_v36 = vpop.f32.mrb[11].mxu1 }
 0x581   : > { %v2583_v38 = vpack.c.bf16 %v1286_v32, %v1285_v33  ;;  %v1257_v39 = vadd.f32 %v1256_v36, %v1129_v28  ;;  %v1518_v33 = vpop.permute.xlu1 %1517  ;;  %v1513_v36 = vpop.permute.xlu0 %1512 }
 0x582   : > { %v1288_v41 = vmax.f32 %v1262_v35, 0.0 }
 0x583   : > { %v1287_v42 = vmax.f32 %v1257_v39, 0.0  ;;  %v2446_v43 = vpop.f32.mrb[12].mxu1  ;;  %2584 = vmatprep.subr.bf16.mxu1 %v2583_v38 }
 0x584   : > { %v1272_v44 = vadd.f32 %v2446_v43, %v1144_v37  ;;  %v1266_v45 = vpop.f32.mrb[13].mxu1  ;;  %2586 = vmatpush3.bf16.msra.mxu1 %v2583_v38 }
 0x585   : > { %v2587_v46 = vpack.c.bf16 %v1288_v41, %v1287_v42  ;;  %v1267_v47 = vadd.f32 %v1266_v45, %v1139_v40  ;;  %v1528_v45 = vpop.permute.xlu1 %1527 }
 0x586   : > { %v1290_v48 = vmax.f32 %v1272_v44, 0.0 }
 0x587   : > { %v1289_v50 = vmax.f32 %v1267_v47, 0.0  ;;  %v2449_v51 = vpop.f32.mrb[14].mxu1  ;;  %2588 = vmatprep.subr.bf16.mxu1 %v2587_v46 }
 0x588   : > { %v1282_v53 = vadd.f32 %v2449_v51, %v1154_v49  ;;  %v1276_v54 = vpop.f32.mrb[15].mxu1  ;;  %2590 = vmatpush3.bf16.msra.mxu1 %v2587_v46 }
 0x589   : > { %v2591_v55 = vpack.c.bf16 %v1290_v48, %v1289_v50  ;;  %v1277_v56 = vadd.f32 %v1276_v54, %v1149_v52  ;;  %v1523_v48 = vpop.permute.xlu0 %1522 }
 0x58a   : > { %v1292_v57 = vmax.f32 %v1282_v53, 0.0 }
 0x58b   : > { %v1291_v58 = vmax.f32 %v1277_v56, 0.0  ;;  %2592 = vmatprep.subr.bf16.mxu1 %v2591_v55  ;;  %v2198_v56 = vld [vmem:[%s3402_s3 + $0x88] sm:$0xff] }
 0x58c   : > { %2594 = vmatpush3.bf16.msra.mxu1 %v2591_v55 }
 0x58d   : > { %v2595_v59 = vpack.c.bf16 %v1292_v57, %v1291_v58  ;;  %v2199_v57 = vld [vmem:[%s3402_s3 + $0x90] sm:$0xff]  ;;  %v2200_v58 = vld [vmem:[%s3402_s3 + $0x98] sm:$0xff] }
 0x58f   : > { %2596 = vmatprep.subr.bf16.mxu1 %v2595_v59 }
 0x590   : > { %2598 = vmatpush3.bf16.msra.mxu1 %v2595_v59  ;;  %v2201_v59 = vld [vmem:[%s3402_s3 + $0xa0] sm:$0xff] }
 0x593   : > { %2467 = vmatmul.mubr.msk.f32.vlgmr.msra.gmra.mrb[16].mxu1 %vm590_vm1, %v2165_v60  ;;  %v2202_v60 = vld [vmem:[%s3402_s3 + $0xa8] sm:$0xff] }
 0x594   : > { %2476 = vmatprep.mubr.msk.f32.mxu1 %vm396_vm0, %v2173_v10 }
 0x666   : > { %v2468_v62 = vpop.f32.mrb[16].mxu1 }
 0x667   : > { %v1387_v63 = vadd.f32 %v2468_v62, %v1307_v61  ;;  %v1381_v0 = vpop.f32.mrb[17].mxu1  ;;  %v2203_v61 = vld [vmem:[%s3402_s3 + $0xb0] sm:$0xff]  ;;  %v2204_v62 = vld [vmem:[%s3402_s3 + $0xb8] sm:$0xff] }
 0x668   : > { %v1382_v5 = vadd.f32 %v1381_v0, %v1302_v4  ;;  %v1693_v0 = vpop.permute.xlu1 %1692 }
 0x669   : > { %2687 = vtanh.f32 %v1387_v63  ;;  %v2221_v63 = vld [vmem:[%s3404_s5 + $0x20] sm:$0xff] }
 0x673   : > { %v2688_v1 = vpop.eup %2687 }
 0x674   : > { %v1391_v2 = vmul.f32 1.442695, %v2688_v1  ;;  %v1688_v1 = vpop.permute.xlu0 %1687 }
 0x676   : > { %2689 = vpow2.f32 %v1391_v2  ;;  %v1703_v2 = vpop.permute.xlu1 %1702 }
 0x678   : > { %v1698_v4 = vpop.permute.xlu0 %1697 }
 0x680   : > { %v2690_v3 = vpop.eup %2689 }
 0x681   : > { %v1393_v7 = vmul.f32 %v2690_v3, %v3154_v34  ;;  %v2174_v34 = vld [vmem:[%s3400_s1 + $0x88] sm:$0xff] }
 0x683   : > { %v1394_v8 = vadd.f32 %v1393_v7, %v1382_v5 }
 0x685   : > { %2470 = vmatpush3.msra.mxu0 %v1394_v8 }
 0x686   : > { %2472 = vmatmul.mubr.msk.f32.vlgmr.msra.gmra.mrb[20].mxu0 %vm396_vm0, %v2170_v9 }
 0x687   : > { %2504 = vmatprep.mubr.msk.f32.mxu0 %vm590_vm1, %v2197_v19 }
 0x759   : > { %v3240_v11 = vpop.f32.mrb[20].mxu0 }
 0x75a   : > { %2172 = vst [vmem:[%s3159_s22 + $0x8] sm:$0xff] %v3240_v11  ;;  %2474 = vmatprep.subr.mxu1 %v3240_v11  ;;  %v2473_v13 = vpop.f32.mrb[21].mxu0  ;;  %s2699_s22 = sshll.u32 %s2794_s16, 4  ;;  %s2700_s22 = int_to_ptr.vmem [resolvable:$false] %s2699_s22 }
 0x75b   : > { %2475 = vmatpush3.msra.mxu1 %v3240_v11  ;;  %s2701_s17 = scalar_lea.vmem %s2700_s22, 512  ;;  %p2702_p0 = scmp.lt.s32.totalorder %s3316_s23, %s2700_s22 }
 0x75c   : > { %2477 = vmatmul.mubr.msk.f32.vlgmr.msra.gmra.mrb[18].mxu1 %vm396_vm0, %v2174_v34  ;;  %p2703_p1 = scmp.lt.s32.totalorder %s2701_s17, %s2695_s27 }
 0x75d   : > { %2479 = vmatprep.mubr.msk.f32.mxu1 %vm396_vm0, %v2175_v12 }
 0x75e   : > { %p2704_p2 = por %p2703_p1, %p2702_p0 }
 0x760   : > { %2480 = vmatmul.mubr.msk.f32.gmra.mrb[20].mxu1 %vm396_vm0, %v2176_v14  ;;  %v1713_v14 = vpop.permute.xlu1 %1712  ;;  %p2705_p3 = pnand %p2704_p2, %p2698_p13 }
 0x761   : > { %2482 = vmatprep.mubr.msk.f32.mxu1 %vm396_vm0, %v2177_v15 }
 0x764   : > { %2483 = vmatmul.mubr.msk.f32.gmra.mrb[22].mxu1 %vm396_vm0, %v2178_v16 }
 0x765   : > { %2485 = vmatprep.mubr.msk.f32.mxu1 %vm396_vm0, %v2179_v17  ;;  %v1708_v17 = vpop.permute.xlu0 %1707 }
 0x768   : > { %2486 = vmatmul.mubr.msk.f32.gmra.mrb[24].mxu1 %vm396_vm0, %v2180_v18 }
 0x769   : > { %2532 = vmatprep.mubr.msk.f32.mxu1 %vm590_vm1, %v2221_v63 }
 0x82f   : > { %v2478_v23 = vpop.f32.mrb[18].mxu1 }
 0x830   : > { %v1626_v25 = vadd.f32 %v2478_v23, %v1498_v20  ;;  %v1620_v26 = vpop.f32.mrb[19].mxu1 }
 0x831   : > { %v1621_v27 = vadd.f32 %v1620_v26, %v1493_v21  ;;  %v1723_v26 = vpop.permute.xlu1 %1722 }
 0x832   : > { %v1660_v28 = vmax.f32 %v1626_v25, 0.0 }
 0x833   : > { %v1659_v29 = vmax.f32 %v1621_v27, 0.0  ;;  %v2481_v30 = vpop.f32.mrb[20].mxu1 }
 0x834   : > { %v1636_v31 = vadd.f32 %v2481_v30, %v1508_v22  ;;  %v1630_v32 = vpop.f32.mrb[21].mxu1 }
 0x835   : > { %v2599_v6 = vpack.c.bf16 %v1660_v28, %v1659_v29  ;;  %v1631_v35 = vadd.f32 %v1630_v32, %v1503_v24  ;;  %v1718_v29 = vpop.permute.xlu0 %1717 }
 0x836   : > { %v1662_v37 = vmax.f32 %v1636_v31, 0.0 }
 0x837   : > { %v1661_v38 = vmax.f32 %v1631_v35, 0.0  ;;  %v2484_v39 = vpop.f32.mrb[22].mxu1  ;;  %2600 = vmatprep.subr.bf16.mxu0 %v2599_v6 }
 0x838   : > { %v1646_v40 = vadd.f32 %v2484_v39, %v1518_v33  ;;  %v1640_v41 = vpop.f32.mrb[23].mxu1  ;;  %2602 = vmatpush3.bf16.msra.mxu0 %v2599_v6 }
 0x839   : > { %v2603_v42 = vpack.c.bf16 %v1662_v37, %v1661_v38  ;;  %v1641_v43 = vadd.f32 %v1640_v41, %v1513_v36  ;;  %v2222_v37 = vld [vmem:[%s3404_s5 + $0x28] sm:$0xff] }
 0x83a   : > { %v1664_v44 = vmax.f32 %v1646_v40, 0.0 }
 0x83b   : > { %v1663_v46 = vmax.f32 %v1641_v43, 0.0  ;;  %v2487_v47 = vpop.f32.mrb[24].mxu1  ;;  %2604 = vmatprep.subr.bf16.mxu0 %v2603_v42 }
 0x83c   : > { %v1656_v49 = vadd.f32 %v2487_v47, %v1528_v45  ;;  %v1650_v50 = vpop.f32.mrb[25].mxu1  ;;  %2606 = vmatpush3.bf16.msra.mxu0 %v2603_v42 }
 0x83d   : > { %v2607_v51 = vpack.c.bf16 %v1664_v44, %v1663_v46  ;;  %v1651_v52 = vadd.f32 %v1650_v50, %v1523_v48 }
 0x83e   : > { %v1666_v53 = vmax.f32 %v1656_v49, 0.0 }
 0x83f   : > { %v1665_v54 = vmax.f32 %v1651_v52, 0.0  ;;  %2608 = vmatprep.subr.bf16.mxu0 %v2607_v51 }
 0x840   : > { %2610 = vmatpush3.bf16.msra.mxu0 %v2607_v51 }
 0x841   : > { %v2611_v55 = vpack.c.bf16 %v1666_v53, %v1665_v54 }
 0x843   : > { %2612 = vmatprep.subr.bf16.mxu0 %v2611_v55 }
 0x844   : > { %2614 = vmatpush3.bf16.msra.mxu0 %v2611_v55 }
 0x847   : > { %2505 = vmatmul.mubr.msk.f32.vlgmr.msra.gmra.mrb[22].mxu0 %vm590_vm1, %v2198_v56 }
 0x848   : > { %2507 = vmatprep.mubr.msk.f32.mxu0 %vm590_vm1, %v2199_v57 }
 0x84b   : > { %2508 = vmatmul.mubr.msk.f32.gmra.mrb[24].mxu0 %vm590_vm1, %v2200_v58 }
 0x84c   : > { %2510 = vmatprep.mubr.msk.f32.mxu0 %vm590_vm1, %v2201_v59 }
 0x84f   : > { %2511 = vmatmul.mubr.msk.f32.gmra.mrb[26].mxu0 %vm590_vm1, %v2202_v60 }
 0x850   : > { %2513 = vmatprep.mubr.msk.f32.mxu0 %vm590_vm1, %v2203_v61 }
 0x853   : > { %2514 = vmatmul.mubr.msk.f32.gmra.mrb[28].mxu0 %vm590_vm1, %v2204_v62 }
 0x91a   : > { %v2506_v3 = vpop.f32.mrb[22].mxu0 }
 0x91b   : > { %v1821_v5 = vadd.f32 %v2506_v3, %v1693_v0  ;;  %v1815_v7 = vpop.f32.mrb[23].mxu0 }
 0x91c   : > { %v1816_v8 = vadd.f32 %v1815_v7, %v1688_v1 }
 0x91d   : > { %v1855_v9 = vmax.f32 %v1821_v5, 0.0 }
 0x91e   : > { %v1854_v10 = vmax.f32 %v1816_v8, 0.0  ;;  %v2509_v34 = vpop.f32.mrb[24].mxu0 }
 0x91f   : > { %v1831_v12 = vadd.f32 %v2509_v34, %v1703_v2  ;;  %v1825_v13 = vpop.f32.mrb[25].mxu0 }
 0x920   : > { %v2615_v15 = vpack.c.bf16 %v1855_v9, %v1854_v10  ;;  %v1826_v16 = vadd.f32 %v1825_v13, %v1698_v4 }
 0x921   : > { %v1857_v18 = vmax.f32 %v1831_v12, 0.0 }
 0x922   : > { %v1856_v19 = vmax.f32 %v1826_v16, 0.0  ;;  %v2512_v20 = vpop.f32.mrb[26].mxu0  ;;  %2616 = vmatprep.subr.bf16.mxu1 %v2615_v15 }
 0x923   : > { %v1841_v21 = vadd.f32 %v2512_v20, %v1713_v14  ;;  %v1835_v22 = vpop.f32.mrb[27].mxu0  ;;  %2618 = vmatpush3.bf16.msra.mxu1 %v2615_v15 }
 0x924   : > { %v2619_v23 = vpack.c.bf16 %v1857_v18, %v1856_v19  ;;  %v1836_v24 = vadd.f32 %v1835_v22, %v1708_v17 }
 0x925   : > { %v1859_v25 = vmax.f32 %v1841_v21, 0.0 }
 0x926   : > { %v1858_v27 = vmax.f32 %v1836_v24, 0.0  ;;  %v2515_v28 = vpop.f32.mrb[28].mxu0  ;;  %2620 = vmatprep.subr.bf16.mxu1 %v2619_v23 }
 0x927   : > { %v1851_v30 = vadd.f32 %v2515_v28, %v1723_v26  ;;  %v1845_v31 = vpop.f32.mrb[29].mxu0  ;;  %2622 = vmatpush3.bf16.msra.mxu1 %v2619_v23 }
 0x928   : > { %v2623_v32 = vpack.c.bf16 %v1859_v25, %v1858_v27  ;;  %v1846_v33 = vadd.f32 %v1845_v31, %v1718_v29 }
 0x929   : > { %v1861_v6 = vmax.f32 %v1851_v30, 0.0 }
 0x92a   : > { %v1860_v35 = vmax.f32 %v1846_v33, 0.0  ;;  %2624 = vmatprep.subr.bf16.mxu1 %v2623_v32 }
 0x92b   : > { %2626 = vmatpush3.bf16.msra.mxu1 %v2623_v32 }
 0x92c   : > { %v2627_v36 = vpack.c.bf16 %v1861_v6, %v1860_v35 }
 0x92e   : > { %2628 = vmatprep.subr.bf16.mxu1 %v2627_v36 }
 0x92f   : > { %2630 = vmatpush3.bf16.msra.mxu1 %v2627_v36 }
 0x932   : > { %2533 = vmatmul.mubr.msk.f32.vlgmr.msra.gmra.mrb[26].mxu1 %vm590_vm1, %v2222_v37 }
 0x933   : > { %2708 = shalt.err (!%p2705_p3)
}
 0x934   : > { %s2709_s21 = scalar_lea.hbm %s3323_s28, 256  ;;  %s2713_s16 = scalar_lea.hbm %s3408_s9, 512 }
 0x935   : > { %p2710_p4 = scmp.ne.s32.totalorder %s3323_s28, %s2709_s21  ;;  %p2714_p9 = scmp.lt.u32.totalorder %s3323_s28, %s3408_s9 }
 0x936   : > { %p2715_p10 = scmp.lt.u32.totalorder %s2713_s16, %s2709_s21  ;;  %p2717_p12 = scmp.lt.u32.totalorder %s2709_s21, %s3323_s28 }
 0x937   : > { %p2711_p7 = pnand %p2710_p4, %p2887_p5 }
 0x938   : > { %p2716_p11 = por %p2715_p10, %p2714_p9 }
 0x939   : > { %p2712_p8 = pneg %p2711_p7 }
 0x93a   : > { %p2718_p13 = por %p2717_p12, %p2716_p11 }
 0x93c   : > { %p2719_p0 = pnand %p2718_p13, %p2712_p8 }
 0x93e   : > { %2722 = shalt.err (!%p2719_p0)
}
 0x93f   : > { %s2795_s27 = smov 128   ;;  %s2796_s17 = smov 256   ;;  %v1876_v38 = vpop.permute.xlu0 %1875  ;;  %v1871_v45 = vpop.permute.xlu1 %1870 }
 0x940   : > { %s2797_s29 = smov 8   ;;  %s3412_s25 = scalar_lea.sflag [#allocation5], %s3151_s14 }
 0x941   : > { %2632 = dma.vmem_to_hbm [thread:$0]  (%p2887_p5), %s3316_s23, 256, %s3323_s28, %s3412_s25, %s2795_s27, %s2796_s17, %s2797_s29  }
 0x942   : > { %s2094_s24 = sshll.u32 %s3151_s14, 3  ;;  %s3413_s23 = sshll.u32 %s2870_s13, 7 }
 0x943   : > { %s327_s21 = scalar_lea.vmem [#allocation2], %s2094_s24  ;;  %s3356_s16 = scalar_lea.hbm %s3407_s8, %s3413_s23 }
 0x944   : > { %s1984_s26 = sshll.u32 %s327_s21, 4  ;;  %s1966_s22 = scalar_lea.sflag [#allocation3], %s3151_s14  ;;  %s3358_s26 = int_to_ptr.vmem [resolvable:$true] %s1984_s26 }
 0x945   : > { %s2723_s27 = scalar_lea.vmem %s3358_s26, 128  ;;  %s2798_s17 = smov [#allocation2]  }
 0x946   : > { %p2724_p1 = scmp.ne.s32.totalorder %s3358_s26, %s2723_s27  ;;  %s2727_s25 = sshll.u32 %s2798_s17, 4  ;;  %s2728_s25 = int_to_ptr.vmem [resolvable:$false] %s2727_s25 }
 0x947   : > { %s2729_s13 = scalar_lea.vmem %s2728_s25, 256  ;;  %p2730_p4 = scmp.lt.s32.totalorder %s3358_s26, %s2728_s25 }
 0x948   : > { %p2725_p2 = pnand %p2724_p1, %p2887_p5  ;;  %p2731_p7 = scmp.lt.s32.totalorder %s2729_s13, %s2723_s27 }
 0x94a   : > { %p2726_p3 = pneg %p2725_p2  ;;  %p2732_p8 = por %p2731_p7, %p2730_p4 }
 0x94c   : > { %p2733_p9 = pnand %p2732_p8, %p2726_p3 }
 0xa05   : > { %v2534_v39 = vpop.f32.mrb[26].mxu1 }
 0xa06   : > { %v1956_v40 = vadd.f32 %v2534_v39, %v1876_v38  ;;  %v1950_v41 = vpop.f32.mrb[27].mxu1 }
 0xa07   : > { %v1951_v46 = vadd.f32 %v1950_v41, %v1871_v45 }
 0xa08   : > { %2691 = vtanh.f32 %v1956_v40 }
 0xa12   : > { %v2692_v42 = vpop.eup %2691 }
 0xa13   : > { %v1960_v43 = vmul.f32 1.442695, %v2692_v42 }
 0xa15   : > { %2693 = vpow2.f32 %v1960_v43 }
 0xa1f   : > { %v2694_v44 = vpop.eup %2693 }
 0xa20   : > { %v1962_v47 = vmul.f32 %v2694_v44, %v3240_v11 }
 0xa22   : > { %v1963_v48 = vadd.f32 %v1962_v47, %v1951_v46 }
 0xa24   : > { %1964 = vst [vmem:[%s327_s21] sm:$0xff] %v1963_v48 }
 0xa25   : > { %2736 = shalt.err (!%p2733_p9)
}
 0xa26   : > { %s2737_s14 = scalar_lea.hbm %s3356_s16, 128  ;;  %s2741_s23 = scalar_lea.hbm %s3407_s8, 256 }
 0xa27   : > { %p2738_p10 = scmp.ne.s32.totalorder %s3356_s16, %s2737_s14  ;;  %p2742_p13 = scmp.lt.u32.totalorder %s3356_s16, %s3407_s8 }
 0xa28   : > { %p2743_p0 = scmp.lt.u32.totalorder %s2741_s23, %s2737_s14  ;;  %p2745_p2 = scmp.lt.u32.totalorder %s2737_s14, %s3356_s16 }
 0xa29   : > { %p2739_p11 = pnand %p2738_p10, %p2887_p5 }
 0xa2a   : > { %p2744_p1 = por %p2743_p0, %p2742_p13 }
 0xa2b   : > { %p2740_p12 = pneg %p2739_p11 }
 0xa2c   : > { %p2746_p3 = por %p2745_p2, %p2744_p1 }
 0xa2e   : > { %p2747_p4 = pnand %p2746_p3, %p2740_p12 }
 0xa30   : > { %2750 = shalt.err (!%p2747_p4)
}
 0xa31   : > { %2631 = dma.vmem_to_hbm [thread:$0]  (%p2887_p5), %s3358_s26, 128, %s3356_s16, %s1966_s22  }
 0xa32 PF: > { %p2642_p7 = scmp.ge.s32.totalorder %s2789_s12, 2  ;;  %s2011_s27 = sand.u32 1, %s2777_s30  }
 0xa33   : > { %s2012_s17 = scalar_lea.sflag [#allocation3], %s2011_s27 }
 0xa34   : > { %p2636_p8 = pnand %p2642_p7, %p2891_p6 }
 0xa36   : > { %2768 = dma.done.wait (!%p2636_p8), %s2012_s17, 128  }
 0xa37   : > { %2770 = vsyncadd (!%p2636_p8), %s2012_s17, 4294967168  ;;  %s2021_s25 = scalar_lea.sflag [#allocation5], %s2011_s27 }
 0xa38   : > { %2772 = dma.done.wait (!%p2636_p8), %s2021_s25, 256  }
 0xa39   : > { %2774 = vsyncadd (!%p2636_p8), %s2021_s25, 4294967040  ;;  %p23_p5 = scmp.ge.s32.totalorder %s2874_s15, 4   ;;  %s3414_s30 = smov %s2781_s10 }
 0xa3a   : > { %s3415_s10 = smov %s2785_s11  ;;  %s3416_s11 = smov %s2885_s18 }
 0xa3b   : > { %s3417_s12 = smov %s2874_s15  ;;  %25 = sbr.rel (!%p23_p5) target bundleno = 5 (0x5), region = 118 }
 0xa42   :  { %2026 = vsyncpa [#allocation3], 1 }
 0xa43   :  { %2028 = vsyncpa [#allocation3 + $0x1], 1 }
 0xa44   :  { %2029 = vsyncpa [#allocation5], 1 }
 0xa45   :  { %2031 = vsyncpa [#allocation5 + $0x1], 1 }

</bundles_post_ra>
